<compile_context>
chip_gen: v5e
topology: v5e:2x2
jax: 0.10.0
libtpu: 0.0.40
codegen_flags: <defaults>
</compile_context>

<pallas_src>
import jax
import jax.numpy as jnp
import numpy as np
from jax.experimental import pallas as pl


# ----------------------------------------------------------------------------
# Fused Pallas kernel: 4 conv blocks + mean + Linear, all VMEM-resident.
# ----------------------------------------------------------------------------
def fused_audio_cnn_kernel(x0_ref,                     # [B, L0-2, 3*10] f32  im2col slab of the input
                           w0_ref, s0_ref, h0_ref,     # [30, 128] bf16, [1,128] f32, [1,128] f32
                           w1_ref, s1_ref, h1_ref,     # [384, 128] bf16, ...
                           w2_ref, s2_ref, h2_ref,     # [384, 256] bf16, ...
                           w3_ref, s3_ref, h3_ref,     # [768, 128] bf16, ...
                           wc_ref, bc_ref,             # [128, 8] bf16, [1, 8] f32
                           o_ref):                     # [B, 8] f32
    batch = x0_ref.shape[0]
    block_refs = ((w0_ref, s0_ref, h0_ref),
                  (w1_ref, s1_ref, h1_ref),
                  (w2_ref, s2_ref, h2_ref),
                  (w3_ref, s3_ref, h3_ref))
    num_blocks = len(block_refs)

    for b in range(batch):                      # tiny batch: unrolled inside ONE launch
        slab = x0_ref[b].astype(jnp.bfloat16)   # [L0-2, 3*Cin0]  (im2col built on host)
        x = None
        for i, (w_ref, s_ref, h_ref) in enumerate(block_refs):
            # Conv1d(k=3, 'valid') as a single im2col matmul, f32 accumulation on the MXU.
            y = jnp.dot(slab, w_ref[...], preferred_element_type=jnp.float32)   # [Lc, Cout]
            # Folded BatchNorm1d (eval) + conv bias, then ReLU (f32 epilogue).
            y = jnp.maximum(y * s_ref[...] + h_ref[...], 0.0)
            # MaxPool1d(kernel_size=2, stride=1): out[t] = max(y[t], y[t+1]).
            x = jnp.maximum(y[:-1, :], y[1:, :])                                 # [Lc-1, Cout]
            if i + 1 < num_blocks:
                # im2col slab for the next block. Cin is always a multiple of 128 here
                # (block-1 output is zero-padded 64->128), so this lane-dim concat is aligned.
                lc = x.shape[0] - 2
                xb = x.astype(jnp.bfloat16)
                slab = jnp.concatenate(
                    [xb[0:lc, :], xb[1:lc + 1, :], xb[2:lc + 2, :]], axis=1)     # [lc, 3*Cin]
        # Classifier: mean over time, then Linear — never leaves VMEM.
        m = jnp.mean(x, axis=0, keepdims=True)                                   # [1, 128]
        logits = jnp.dot(m, wc_ref[...].astype(jnp.float32),
                         preferred_element_type=jnp.float32) + bc_ref[...]       # [1, 8]
        o_ref[pl.ds(b, 1), :] = logits


# ----------------------------------------------------------------------------
# Host-side wrapper: one pallas_call, no grid (everything fits trivially in VMEM).
# ----------------------------------------------------------------------------
@jax.jit
def audio_cnn_pool_forward(x_ncl, kparams):
    """x_ncl: [B, 10, L] (PyTorch NCL). Returns [B, num_classes]."""
    (blk0, blk1, blk2, blk3), wc, bc = kparams
    x = jnp.transpose(x_ncl, (0, 2, 1)).astype(jnp.float32)        # NCL -> NLC, [B, L, 10]
    bsz, lin, _ = x.shape
    lc0 = lin - 2
    # Block-1 im2col slab built on the host (Cin=10 is not lane-aligned; this is folded into
    # the transpose and costs a few KB of extra input DMA).
    slab0 = jnp.concatenate(
        [x[:, 0:lc0, :], x[:, 1:lc0 + 1, :], x[:, 2:lc0 + 2, :]], axis=-1)       # [B, L-2, 30]
    num_classes = wc.shape[-1]
    return pl.pallas_call(
        fused_audio_cnn_kernel,
        out_shape=jax.ShapeDtypeStruct((bsz, num_classes), jnp.float32),
    )(slab0, *blk0, *blk1, *blk2, *blk3, wc, bc)


# ----------------------------------------------------------------------------
# Parameter construction (deterministic, synthetic) + kernel-ready packing.
# ----------------------------------------------------------------------------
def make_block_params(key, cin, cout, eps=1e-5):
    kw, kb, kg, kbeta, krm, krv = jax.random.split(key, 6)
    return dict(
        w=jax.random.normal(kw, (3, cin, cout), jnp.float32) * 0.1,   # [K, Cin, Cout]
        b=jax.random.normal(kb, (cout,), jnp.float32) * 0.1,
        gamma=1.0 + 0.1 * jax.random.normal(kg, (cout,), jnp.float32),
        beta=0.1 * jax.random.normal(kbeta, (cout,), jnp.float32),
        mean=0.1 * jax.random.normal(krm, (cout,), jnp.float32),
        var=1.0 + 0.1 * jax.random.uniform(krv, (cout,), jnp.float32),
        eps=eps,
    )


def make_params(key, num_classes=8, h_dim=128, out_dim=128):
    keys = jax.random.split(key, 6)
    chans = [10, 64, h_dim, 256, out_dim]
    raw_blocks = [make_block_params(keys[i], chans[i], chans[i + 1]) for i in range(4)]
    wc = (jax.random.normal(keys[4], (h_dim, num_classes), jnp.float32) * 0.1).astype(jnp.bfloat16)
    bc = (jax.random.normal(keys[5], (num_classes,), jnp.float32) * 0.1).reshape(1, num_classes)
    return raw_blocks, wc, bc


# Per-block (Cin_pad, Cout_pad): block-1 Cout and block-2 Cin padded 64 -> 128 so the in-kernel
# im2col concat is always lane-aligned. Block-1's Cin stays 10 (its slab is built on the host).
_CIN_PAD = (10, 128, 128, 256)
_COUT_PAD = (128, 128, 256, 128)


def fold_and_pack_block(raw, cin_pad, cout_pad):
    """Fold eval-mode BN + conv bias; pad channels; im2col-reshape weight; cast weight to bf16."""
    w, bias = raw["w"], raw["b"]
    k, cin, cout = w.shape
    scale = raw["gamma"] / jnp.sqrt(raw["var"] + raw["eps"])
    shift = raw["beta"] - raw["mean"] * scale + bias * scale
    w_pad = jnp.zeros((k, cin_pad, cout_pad), jnp.float32).at[:, :cin, :cout].set(w)
    w_im2col = w_pad.reshape(k * cin_pad, cout_pad).astype(jnp.bfloat16)   # [3*Cin_pad, Cout_pad]
    scale_pad = jnp.zeros((1, cout_pad), jnp.float32).at[0, :cout].set(scale)
    shift_pad = jnp.zeros((1, cout_pad), jnp.float32).at[0, :cout].set(shift)
    return w_im2col, scale_pad, shift_pad


def prepare_kernel_params(raw_blocks, wc, bc):
    packed = tuple(fold_and_pack_block(rb, ci, co)
                   for rb, ci, co in zip(raw_blocks, _CIN_PAD, _COUT_PAD))
    return packed, wc, bc


# ----------------------------------------------------------------------------
# Pure-JAX (XLA) reference: unfolded BN, no padding, per-tap einsums — independent of the
# kernel's im2col/padding packing, but with the same bf16 weight/activation rounding points.
# ----------------------------------------------------------------------------
def reference_forward(x_ncl, raw_blocks, wc, bc):
    x = jnp.transpose(x_ncl, (0, 2, 1)).astype(jnp.float32)   # [B, L, C]
    for raw in raw_blocks:
        w = raw["w"].astype(jnp.bfloat16)                     # [3, Cin, Cout]
        lin = x.shape[1]
        lc = lin - 2
        xb = x.astype(jnp.bfloat16)
        y = (jnp.einsum("blc,co->blo", xb[:, 0:lc, :], w[0], preferred_element_type=jnp.float32)
             + jnp.einsum("blc,co->blo", xb[:, 1:lc + 1, :], w[1], preferred_element_type=jnp.float32)
             + jnp.einsum("blc,co->blo", xb[:, 2:lc + 2, :], w[2], preferred_element_type=jnp.float32))
        scale = raw["gamma"] / jnp.sqrt(raw["var"] + raw["eps"])
        y = (y + raw["b"] - raw["mean"]) * scale + raw["beta"]
        y = jnp.maximum(y, 0.0)
        x = jnp.maximum(y[:, 0:lc - 1, :], y[:, 1:lc, :])
    m = jnp.mean(x, axis=1)                                   # [B, 128]
    return m @ wc.astype(jnp.float32) + bc


# ----------------------------------------------------------------------------
if __name__ == "__main__":
    key = jax.random.PRNGKey(0)
    k_in, k_par = jax.random.split(key)

    B, C_IN, L = 2, 10, 20   # each block shrinks L by 3: 20 -> 17 -> 14 -> 11 -> 8
    x = jax.random.normal(k_in, (B, C_IN, L), jnp.float32)    # PyTorch NCL input

    raw_blocks, wc, bc = make_params(k_par)
    kparams = prepare_kernel_params(raw_blocks, wc, bc)

    out = audio_cnn_pool_forward(x, kparams)
    out = jax.block_until_ready(out)

    ref = reference_forward(x, raw_blocks, wc, bc)
    assert out.shape == (B, 8), out.shape
    np.testing.assert_allclose(np.asarray(out), np.asarray(ref), rtol=1e-2, atol=1e-2)

    print("KERNEL_OK")
</pallas_src>

<mosaic_0001>
module attributes {stable_mosaic.version = 11 : i64} {
  func.func @fused_audio_cnn_kernel(%arg0: memref<2x18x30xf32, #tpu.memory_space<vmem>>, %arg1: memref<30x128xbf16, #tpu.memory_space<vmem>>, %arg2: memref<1x128xf32, #tpu.memory_space<vmem>>, %arg3: memref<1x128xf32, #tpu.memory_space<vmem>>, %arg4: memref<384x128xbf16, #tpu.memory_space<vmem>>, %arg5: memref<1x128xf32, #tpu.memory_space<vmem>>, %arg6: memref<1x128xf32, #tpu.memory_space<vmem>>, %arg7: memref<384x256xbf16, #tpu.memory_space<vmem>>, %arg8: memref<1x256xf32, #tpu.memory_space<vmem>>, %arg9: memref<1x256xf32, #tpu.memory_space<vmem>>, %arg10: memref<768x128xbf16, #tpu.memory_space<vmem>>, %arg11: memref<1x128xf32, #tpu.memory_space<vmem>>, %arg12: memref<1x128xf32, #tpu.memory_space<vmem>>, %arg13: memref<128x8xbf16, #tpu.memory_space<vmem>>, %arg14: memref<1x8xf32, #tpu.memory_space<vmem>>, %arg15: memref<2x8xf32, #tpu.memory_space<vmem>>) attributes {dimension_semantics = [], scalar_prefetch = 0 : i64, scratch_operands = 0 : i64, tpu.core_type = #tpu.core_type<tc>} {
    %c0 = arith.constant 0 : index
    %c0_0 = arith.constant 0 : index
    %c0_1 = arith.constant 0 : index
    %0 = vector.load %arg0[%c0, %c0_0, %c0_1] : memref<2x18x30xf32, #tpu.memory_space<vmem>>, vector<1x18x30xf32>
    %1 = vector.shape_cast %0 : vector<1x18x30xf32> to vector<18x30xf32>
    %2 = arith.truncf %1 : vector<18x30xf32> to vector<18x30xbf16>
    %c0_2 = arith.constant 0 : index
    %c0_3 = arith.constant 0 : index
    %3 = vector.load %arg1[%c0_2, %c0_3] : memref<30x128xbf16, #tpu.memory_space<vmem>>, vector<30x128xbf16>
    %cst = arith.constant dense<0.000000e+00> : vector<18x128xf32>
    %4 = tpu.matmul %2, %3, %cst {dimension_numbers = #tpu.dot_dimension_numbers<[1], [0], [0], [1], [0, 0, 1, 1], [], []>} : vector<18x30xbf16>, vector<30x128xbf16>, vector<18x128xf32> -> vector<18x128xf32>
    %c0_4 = arith.constant 0 : index
    %c0_5 = arith.constant 0 : index
    %5 = vector.load %arg2[%c0_4, %c0_5] : memref<1x128xf32, #tpu.memory_space<vmem>>, vector<1x128xf32>
    %6 = vector.broadcast %5 : vector<1x128xf32> to vector<18x128xf32>
    %7 = arith.mulf %4, %6 : vector<18x128xf32>
    %c0_6 = arith.constant 0 : index
    %c0_7 = arith.constant 0 : index
    %8 = vector.load %arg3[%c0_6, %c0_7] : memref<1x128xf32, #tpu.memory_space<vmem>>, vector<1x128xf32>
    %9 = vector.broadcast %8 : vector<1x128xf32> to vector<18x128xf32>
    %10 = arith.addf %7, %9 : vector<18x128xf32>
    %cst_8 = arith.constant 0.000000e+00 : f32
    %11 = vector.broadcast %cst_8 : f32 to vector<18x128xf32>
    %12 = arith.maximumf %10, %11 : vector<18x128xf32>
    %13 = vector.extract_strided_slice %12 {offsets = [0, 0], sizes = [17, 128], strides = [1, 1]} : vector<18x128xf32> to vector<17x128xf32>
    %14 = vector.extract_strided_slice %12 {offsets = [1, 0], sizes = [17, 128], strides = [1, 1]} : vector<18x128xf32> to vector<17x128xf32>
    %15 = arith.maximumf %13, %14 : vector<17x128xf32>
    %16 = arith.truncf %15 : vector<17x128xf32> to vector<17x128xbf16>
    %17 = vector.extract_strided_slice %16 {offsets = [0, 0], sizes = [15, 128], strides = [1, 1]} : vector<17x128xbf16> to vector<15x128xbf16>
    %18 = vector.extract_strided_slice %16 {offsets = [1, 0], sizes = [15, 128], strides = [1, 1]} : vector<17x128xbf16> to vector<15x128xbf16>
    %19 = vector.extract_strided_slice %16 {offsets = [2, 0], sizes = [15, 128], strides = [1, 1]} : vector<17x128xbf16> to vector<15x128xbf16>
    %20 = tpu.concatenate %17, %18, %19 in 1 : vector<15x128xbf16>, vector<15x128xbf16>, vector<15x128xbf16> -> vector<15x384xbf16>
    %c0_9 = arith.constant 0 : index
    %c0_10 = arith.constant 0 : index
    %21 = vector.load %arg4[%c0_9, %c0_10] : memref<384x128xbf16, #tpu.memory_space<vmem>>, vector<384x128xbf16>
    %cst_11 = arith.constant dense<0.000000e+00> : vector<15x128xf32>
    %22 = tpu.matmul %20, %21, %cst_11 {dimension_numbers = #tpu.dot_dimension_numbers<[1], [0], [0], [1], [0, 0, 1, 1], [], []>} : vector<15x384xbf16>, vector<384x128xbf16>, vector<15x128xf32> -> vector<15x128xf32>
    %c0_12 = arith.constant 0 : index
    %c0_13 = arith.constant 0 : index
    %23 = vector.load %arg5[%c0_12, %c0_13] : memref<1x128xf32, #tpu.memory_space<vmem>>, vector<1x128xf32>
    %24 = vector.broadcast %23 : vector<1x128xf32> to vector<15x128xf32>
    %25 = arith.mulf %22, %24 : vector<15x128xf32>
    %c0_14 = arith.constant 0 : index
    %c0_15 = arith.constant 0 : index
    %26 = vector.load %arg6[%c0_14, %c0_15] : memref<1x128xf32, #tpu.memory_space<vmem>>, vector<1x128xf32>
    %27 = vector.broadcast %26 : vector<1x128xf32> to vector<15x128xf32>
    %28 = arith.addf %25, %27 : vector<15x128xf32>
    %cst_16 = arith.constant 0.000000e+00 : f32
    %29 = vector.broadcast %cst_16 : f32 to vector<15x128xf32>
    %30 = arith.maximumf %28, %29 : vector<15x128xf32>
    %31 = vector.extract_strided_slice %30 {offsets = [0, 0], sizes = [14, 128], strides = [1, 1]} : vector<15x128xf32> to vector<14x128xf32>
    %32 = vector.extract_strided_slice %30 {offsets = [1, 0], sizes = [14, 128], strides = [1, 1]} : vector<15x128xf32> to vector<14x128xf32>
    %33 = arith.maximumf %31, %32 : vector<14x128xf32>
    %34 = arith.truncf %33 : vector<14x128xf32> to vector<14x128xbf16>
    %35 = vector.extract_strided_slice %34 {offsets = [0, 0], sizes = [12, 128], strides = [1, 1]} : vector<14x128xbf16> to vector<12x128xbf16>
    %36 = vector.extract_strided_slice %34 {offsets = [1, 0], sizes = [12, 128], strides = [1, 1]} : vector<14x128xbf16> to vector<12x128xbf16>
    %37 = vector.extract_strided_slice %34 {offsets = [2, 0], sizes = [12, 128], strides = [1, 1]} : vector<14x128xbf16> to vector<12x128xbf16>
    %38 = tpu.concatenate %35, %36, %37 in 1 : vector<12x128xbf16>, vector<12x128xbf16>, vector<12x128xbf16> -> vector<12x384xbf16>
    %c0_17 = arith.constant 0 : index
    %c0_18 = arith.constant 0 : index
    %39 = vector.load %arg7[%c0_17, %c0_18] : memref<384x256xbf16, #tpu.memory_space<vmem>>, vector<384x256xbf16>
    %cst_19 = arith.constant dense<0.000000e+00> : vector<12x256xf32>
    %40 = tpu.matmul %38, %39, %cst_19 {dimension_numbers = #tpu.dot_dimension_numbers<[1], [0], [0], [1], [0, 0, 1, 1], [], []>} : vector<12x384xbf16>, vector<384x256xbf16>, vector<12x256xf32> -> vector<12x256xf32>
    %c0_20 = arith.constant 0 : index
    %c0_21 = arith.constant 0 : index
    %41 = vector.load %arg8[%c0_20, %c0_21] : memref<1x256xf32, #tpu.memory_space<vmem>>, vector<1x256xf32>
    %42 = vector.broadcast %41 : vector<1x256xf32> to vector<12x256xf32>
    %43 = arith.mulf %40, %42 : vector<12x256xf32>
    %c0_22 = arith.constant 0 : index
    %c0_23 = arith.constant 0 : index
    %44 = vector.load %arg9[%c0_22, %c0_23] : memref<1x256xf32, #tpu.memory_space<vmem>>, vector<1x256xf32>
    %45 = vector.broadcast %44 : vector<1x256xf32> to vector<12x256xf32>
    %46 = arith.addf %43, %45 : vector<12x256xf32>
    %cst_24 = arith.constant 0.000000e+00 : f32
    %47 = vector.broadcast %cst_24 : f32 to vector<12x256xf32>
    %48 = arith.maximumf %46, %47 : vector<12x256xf32>
    %49 = vector.extract_strided_slice %48 {offsets = [0, 0], sizes = [11, 256], strides = [1, 1]} : vector<12x256xf32> to vector<11x256xf32>
    %50 = vector.extract_strided_slice %48 {offsets = [1, 0], sizes = [11, 256], strides = [1, 1]} : vector<12x256xf32> to vector<11x256xf32>
    %51 = arith.maximumf %49, %50 : vector<11x256xf32>
    %52 = arith.truncf %51 : vector<11x256xf32> to vector<11x256xbf16>
    %53 = vector.extract_strided_slice %52 {offsets = [0, 0], sizes = [9, 256], strides = [1, 1]} : vector<11x256xbf16> to vector<9x256xbf16>
    %54 = vector.extract_strided_slice %52 {offsets = [1, 0], sizes = [9, 256], strides = [1, 1]} : vector<11x256xbf16> to vector<9x256xbf16>
    %55 = vector.extract_strided_slice %52 {offsets = [2, 0], sizes = [9, 256], strides = [1, 1]} : vector<11x256xbf16> to vector<9x256xbf16>
    %56 = tpu.concatenate %53, %54, %55 in 1 : vector<9x256xbf16>, vector<9x256xbf16>, vector<9x256xbf16> -> vector<9x768xbf16>
    %c0_25 = arith.constant 0 : index
    %c0_26 = arith.constant 0 : index
    %57 = vector.load %arg10[%c0_25, %c0_26] : memref<768x128xbf16, #tpu.memory_space<vmem>>, vector<768x128xbf16>
    %cst_27 = arith.constant dense<0.000000e+00> : vector<9x128xf32>
    %58 = tpu.matmul %56, %57, %cst_27 {dimension_numbers = #tpu.dot_dimension_numbers<[1], [0], [0], [1], [0, 0, 1, 1], [], []>} : vector<9x768xbf16>, vector<768x128xbf16>, vector<9x128xf32> -> vector<9x128xf32>
    %c0_28 = arith.constant 0 : index
    %c0_29 = arith.constant 0 : index
    %59 = vector.load %arg11[%c0_28, %c0_29] : memref<1x128xf32, #tpu.memory_space<vmem>>, vector<1x128xf32>
    %60 = vector.broadcast %59 : vector<1x128xf32> to vector<9x128xf32>
    %61 = arith.mulf %58, %60 : vector<9x128xf32>
    %c0_30 = arith.constant 0 : index
    %c0_31 = arith.constant 0 : index
    %62 = vector.load %arg12[%c0_30, %c0_31] : memref<1x128xf32, #tpu.memory_space<vmem>>, vector<1x128xf32>
    %63 = vector.broadcast %62 : vector<1x128xf32> to vector<9x128xf32>
    %64 = arith.addf %61, %63 : vector<9x128xf32>
    %cst_32 = arith.constant 0.000000e+00 : f32
    %65 = vector.broadcast %cst_32 : f32 to vector<9x128xf32>
    %66 = arith.maximumf %64, %65 : vector<9x128xf32>
    %67 = vector.extract_strided_slice %66 {offsets = [0, 0], sizes = [8, 128], strides = [1, 1]} : vector<9x128xf32> to vector<8x128xf32>
    %68 = vector.extract_strided_slice %66 {offsets = [1, 0], sizes = [8, 128], strides = [1, 1]} : vector<9x128xf32> to vector<8x128xf32>
    %69 = arith.maximumf %67, %68 : vector<8x128xf32>
    %cst_33 = arith.constant dense<0.000000e+00> : vector<128xf32>
    %70 = vector.multi_reduction <add>, %69, %cst_33 [0] : vector<8x128xf32> to vector<128xf32>
    %71 = vector.shape_cast %70 : vector<128xf32> to vector<1x128xf32>
    %cst_34 = arith.constant 8.000000e+00 : f32
    %72 = vector.broadcast %cst_34 : f32 to vector<1x128xf32>
    %73 = arith.divf %71, %72 : vector<1x128xf32>
    %c0_35 = arith.constant 0 : index
    %c0_36 = arith.constant 0 : index
    %74 = vector.load %arg13[%c0_35, %c0_36] : memref<128x8xbf16, #tpu.memory_space<vmem>>, vector<128x8xbf16>
    %75 = arith.extf %74 : vector<128x8xbf16> to vector<128x8xf32>
    %cst_37 = arith.constant dense<0.000000e+00> : vector<1x8xf32>
    %76 = tpu.matmul %73, %75, %cst_37 {dimension_numbers = #tpu.dot_dimension_numbers<[1], [0], [0], [1], [0, 0, 1, 1], [], []>} : vector<1x128xf32>, vector<128x8xf32>, vector<1x8xf32> -> vector<1x8xf32>
    %c0_38 = arith.constant 0 : index
    %c0_39 = arith.constant 0 : index
    %77 = vector.load %arg14[%c0_38, %c0_39] : memref<1x8xf32, #tpu.memory_space<vmem>>, vector<1x8xf32>
    %78 = arith.addf %76, %77 : vector<1x8xf32>
    %c0_40 = arith.constant 0 : index
    %c0_41 = arith.constant 0 : index
    %79 = vector.load %arg15[%c0_40, %c0_41] : memref<2x8xf32, #tpu.memory_space<vmem>>, vector<1x8xf32>
    tpu.vector_store %arg15[%c0_40, %c0_41], %78 {strides = array<i32>} : memref<2x8xf32, #tpu.memory_space<vmem>>, vector<1x8xf32>,
    %c1 = arith.constant 1 : index
    %c0_42 = arith.constant 0 : index
    %c0_43 = arith.constant 0 : index
    %80 = vector.load %arg0[%c1, %c0_42, %c0_43] : memref<2x18x30xf32, #tpu.memory_space<vmem>>, vector<1x18x30xf32>
    %81 = vector.shape_cast %80 : vector<1x18x30xf32> to vector<18x30xf32>
    %82 = arith.truncf %81 : vector<18x30xf32> to vector<18x30xbf16>
    %c0_44 = arith.constant 0 : index
    %c0_45 = arith.constant 0 : index
    %83 = vector.load %arg1[%c0_44, %c0_45] : memref<30x128xbf16, #tpu.memory_space<vmem>>, vector<30x128xbf16>
    %cst_46 = arith.constant dense<0.000000e+00> : vector<18x128xf32>
    %84 = tpu.matmul %82, %83, %cst_46 {dimension_numbers = #tpu.dot_dimension_numbers<[1], [0], [0], [1], [0, 0, 1, 1], [], []>} : vector<18x30xbf16>, vector<30x128xbf16>, vector<18x128xf32> -> vector<18x128xf32>
    %c0_47 = arith.constant 0 : index
    %c0_48 = arith.constant 0 : index
    %85 = vector.load %arg2[%c0_47, %c0_48] : memref<1x128xf32, #tpu.memory_space<vmem>>, vector<1x128xf32>
    %86 = vector.broadcast %85 : vector<1x128xf32> to vector<18x128xf32>
    %87 = arith.mulf %84, %86 : vector<18x128xf32>
    %c0_49 = arith.constant 0 : index
    %c0_50 = arith.constant 0 : index
    %88 = vector.load %arg3[%c0_49, %c0_50] : memref<1x128xf32, #tpu.memory_space<vmem>>, vector<1x128xf32>
    %89 = vector.broadcast %88 : vector<1x128xf32> to vector<18x128xf32>
    %90 = arith.addf %87, %89 : vector<18x128xf32>
    %cst_51 = arith.constant 0.000000e+00 : f32
    %91 = vector.broadcast %cst_51 : f32 to vector<18x128xf32>
    %92 = arith.maximumf %90, %91 : vector<18x128xf32>
    %93 = vector.extract_strided_slice %92 {offsets = [0, 0], sizes = [17, 128], strides = [1, 1]} : vector<18x128xf32> to vector<17x128xf32>
    %94 = vector.extract_strided_slice %92 {offsets = [1, 0], sizes = [17, 128], strides = [1, 1]} : vector<18x128xf32> to vector<17x128xf32>
    %95 = arith.maximumf %93, %94 : vector<17x128xf32>
    %96 = arith.truncf %95 : vector<17x128xf32> to vector<17x128xbf16>
    %97 = vector.extract_strided_slice %96 {offsets = [0, 0], sizes = [15, 128], strides = [1, 1]} : vector<17x128xbf16> to vector<15x128xbf16>
    %98 = vector.extract_strided_slice %96 {offsets = [1, 0], sizes = [15, 128], strides = [1, 1]} : vector<17x128xbf16> to vector<15x128xbf16>
    %99 = vector.extract_strided_slice %96 {offsets = [2, 0], sizes = [15, 128], strides = [1, 1]} : vector<17x128xbf16> to vector<15x128xbf16>
    %100 = tpu.concatenate %97, %98, %99 in 1 : vector<15x128xbf16>, vector<15x128xbf16>, vector<15x128xbf16> -> vector<15x384xbf16>
    %c0_52 = arith.constant 0 : index
    %c0_53 = arith.constant 0 : index
    %101 = vector.load %arg4[%c0_52, %c0_53] : memref<384x128xbf16, #tpu.memory_space<vmem>>, vector<384x128xbf16>
    %cst_54 = arith.constant dense<0.000000e+00> : vector<15x128xf32>
    %102 = tpu.matmul %100, %101, %cst_54 {dimension_numbers = #tpu.dot_dimension_numbers<[1], [0], [0], [1], [0, 0, 1, 1], [], []>} : vector<15x384xbf16>, vector<384x128xbf16>, vector<15x128xf32> -> vector<15x128xf32>
    %c0_55 = arith.constant 0 : index
    %c0_56 = arith.constant 0 : index
    %103 = vector.load %arg5[%c0_55, %c0_56] : memref<1x128xf32, #tpu.memory_space<vmem>>, vector<1x128xf32>
    %104 = vector.broadcast %103 : vector<1x128xf32> to vector<15x128xf32>
    %105 = arith.mulf %102, %104 : vector<15x128xf32>
    %c0_57 = arith.constant 0 : index
    %c0_58 = arith.constant 0 : index
    %106 = vector.load %arg6[%c0_57, %c0_58] : memref<1x128xf32, #tpu.memory_space<vmem>>, vector<1x128xf32>
    %107 = vector.broadcast %106 : vector<1x128xf32> to vector<15x128xf32>
    %108 = arith.addf %105, %107 : vector<15x128xf32>
    %cst_59 = arith.constant 0.000000e+00 : f32
    %109 = vector.broadcast %cst_59 : f32 to vector<15x128xf32>
    %110 = arith.maximumf %108, %109 : vector<15x128xf32>
    %111 = vector.extract_strided_slice %110 {offsets = [0, 0], sizes = [14, 128], strides = [1, 1]} : vector<15x128xf32> to vector<14x128xf32>
    %112 = vector.extract_strided_slice %110 {offsets = [1, 0], sizes = [14, 128], strides = [1, 1]} : vector<15x128xf32> to vector<14x128xf32>
    %113 = arith.maximumf %111, %112 : vector<14x128xf32>
    %114 = arith.truncf %113 : vector<14x128xf32> to vector<14x128xbf16>
    %115 = vector.extract_strided_slice %114 {offsets = [0, 0], sizes = [12, 128], strides = [1, 1]} : vector<14x128xbf16> to vector<12x128xbf16>
    %116 = vector.extract_strided_slice %114 {offsets = [1, 0], sizes = [12, 128], strides = [1, 1]} : vector<14x128xbf16> to vector<12x128xbf16>
    %117 = vector.extract_strided_slice %114 {offsets = [2, 0], sizes = [12, 128], strides = [1, 1]} : vector<14x128xbf16> to vector<12x128xbf16>
    %118 = tpu.concatenate %115, %116, %117 in 1 : vector<12x128xbf16>, vector<12x128xbf16>, vector<12x128xbf16> -> vector<12x384xbf16>
    %c0_60 = arith.constant 0 : index
    %c0_61 = arith.constant 0 : index
    %119 = vector.load %arg7[%c0_60, %c0_61] : memref<384x256xbf16, #tpu.memory_space<vmem>>, vector<384x256xbf16>
    %cst_62 = arith.constant dense<0.000000e+00> : vector<12x256xf32>
    %120 = tpu.matmul %118, %119, %cst_62 {dimension_numbers = #tpu.dot_dimension_numbers<[1], [0], [0], [1], [0, 0, 1, 1], [], []>} : vector<12x384xbf16>, vector<384x256xbf16>, vector<12x256xf32> -> vector<12x256xf32>
    %c0_63 = arith.constant 0 : index
    %c0_64 = arith.constant 0 : index
    %121 = vector.load %arg8[%c0_63, %c0_64] : memref<1x256xf32, #tpu.memory_space<vmem>>, vector<1x256xf32>
    %122 = vector.broadcast %121 : vector<1x256xf32> to vector<12x256xf32>
    %123 = arith.mulf %120, %122 : vector<12x256xf32>
    %c0_65 = arith.constant 0 : index
    %c0_66 = arith.constant 0 : index
    %124 = vector.load %arg9[%c0_65, %c0_66] : memref<1x256xf32, #tpu.memory_space<vmem>>, vector<1x256xf32>
    %125 = vector.broadcast %124 : vector<1x256xf32> to vector<12x256xf32>
    %126 = arith.addf %123, %125 : vector<12x256xf32>
    %cst_67 = arith.constant 0.000000e+00 : f32
    %127 = vector.broadcast %cst_67 : f32 to vector<12x256xf32>
    %128 = arith.maximumf %126, %127 : vector<12x256xf32>
    %129 = vector.extract_strided_slice %128 {offsets = [0, 0], sizes = [11, 256], strides = [1, 1]} : vector<12x256xf32> to vector<11x256xf32>
    %130 = vector.extract_strided_slice %128 {offsets = [1, 0], sizes = [11, 256], strides = [1, 1]} : vector<12x256xf32> to vector<11x256xf32>
    %131 = arith.maximumf %129, %130 : vector<11x256xf32>
    %132 = arith.truncf %131 : vector<11x256xf32> to vector<11x256xbf16>
    %133 = vector.extract_strided_slice %132 {offsets = [0, 0], sizes = [9, 256], strides = [1, 1]} : vector<11x256xbf16> to vector<9x256xbf16>
    %134 = vector.extract_strided_slice %132 {offsets = [1, 0], sizes = [9, 256], strides = [1, 1]} : vector<11x256xbf16> to vector<9x256xbf16>
    %135 = vector.extract_strided_slice %132 {offsets = [2, 0], sizes = [9, 256], strides = [1, 1]} : vector<11x256xbf16> to vector<9x256xbf16>
    %136 = tpu.concatenate %133, %134, %135 in 1 : vector<9x256xbf16>, vector<9x256xbf16>, vector<9x256xbf16> -> vector<9x768xbf16>
    %c0_68 = arith.constant 0 : index
    %c0_69 = arith.constant 0 : index
    %137 = vector.load %arg10[%c0_68, %c0_69] : memref<768x128xbf16, #tpu.memory_space<vmem>>, vector<768x128xbf16>
    %cst_70 = arith.constant dense<0.000000e+00> : vector<9x128xf32>
    %138 = tpu.matmul %136, %137, %cst_70 {dimension_numbers = #tpu.dot_dimension_numbers<[1], [0], [0], [1], [0, 0, 1, 1], [], []>} : vector<9x768xbf16>, vector<768x128xbf16>, vector<9x128xf32> -> vector<9x128xf32>
    %c0_71 = arith.constant 0 : index
    %c0_72 = arith.constant 0 : index
    %139 = vector.load %arg11[%c0_71, %c0_72] : memref<1x128xf32, #tpu.memory_space<vmem>>, vector<1x128xf32>
    %140 = vector.broadcast %139 : vector<1x128xf32> to vector<9x128xf32>
    %141 = arith.mulf %138, %140 : vector<9x128xf32>
    %c0_73 = arith.constant 0 : index
    %c0_74 = arith.constant 0 : index
    %142 = vector.load %arg12[%c0_73, %c0_74] : memref<1x128xf32, #tpu.memory_space<vmem>>, vector<1x128xf32>
    %143 = vector.broadcast %142 : vector<1x128xf32> to vector<9x128xf32>
    %144 = arith.addf %141, %143 : vector<9x128xf32>
    %cst_75 = arith.constant 0.000000e+00 : f32
    %145 = vector.broadcast %cst_75 : f32 to vector<9x128xf32>
    %146 = arith.maximumf %144, %145 : vector<9x128xf32>
    %147 = vector.extract_strided_slice %146 {offsets = [0, 0], sizes = [8, 128], strides = [1, 1]} : vector<9x128xf32> to vector<8x128xf32>
    %148 = vector.extract_strided_slice %146 {offsets = [1, 0], sizes = [8, 128], strides = [1, 1]} : vector<9x128xf32> to vector<8x128xf32>
    %149 = arith.maximumf %147, %148 : vector<8x128xf32>
    %cst_76 = arith.constant dense<0.000000e+00> : vector<128xf32>
    %150 = vector.multi_reduction <add>, %149, %cst_76 [0] : vector<8x128xf32> to vector<128xf32>
    %151 = vector.shape_cast %150 : vector<128xf32> to vector<1x128xf32>
    %cst_77 = arith.constant 8.000000e+00 : f32
    %152 = vector.broadcast %cst_77 : f32 to vector<1x128xf32>
    %153 = arith.divf %151, %152 : vector<1x128xf32>
    %c0_78 = arith.constant 0 : index
    %c0_79 = arith.constant 0 : index
    %154 = vector.load %arg13[%c0_78, %c0_79] : memref<128x8xbf16, #tpu.memory_space<vmem>>, vector<128x8xbf16>
    %155 = arith.extf %154 : vector<128x8xbf16> to vector<128x8xf32>
    %cst_80 = arith.constant dense<0.000000e+00> : vector<1x8xf32>
    %156 = tpu.matmul %153, %155, %cst_80 {dimension_numbers = #tpu.dot_dimension_numbers<[1], [0], [0], [1], [0, 0, 1, 1], [], []>} : vector<1x128xf32>, vector<128x8xf32>, vector<1x8xf32> -> vector<1x8xf32>
    %c0_81 = arith.constant 0 : index
    %c0_82 = arith.constant 0 : index
    %157 = vector.load %arg14[%c0_81, %c0_82] : memref<1x8xf32, #tpu.memory_space<vmem>>, vector<1x8xf32>
    %158 = arith.addf %156, %157 : vector<1x8xf32>
    %c1_83 = arith.constant 1 : index
    %c0_84 = arith.constant 0 : index
    %159 = vector.load %arg15[%c1_83, %c0_84] : memref<2x8xf32, #tpu.memory_space<vmem>>, vector<1x8xf32>
    tpu.vector_store %arg15[%c1_83, %c0_84], %158 {strides = array<i32>} : memref<2x8xf32, #tpu.memory_space<vmem>>, vector<1x8xf32>,
    return
  }
}

</mosaic_0001>

<bundles_post_ra>
// kernel: audio_cnn_pool_forward.1
= control target key start
LH: loop header
LB: loop body
LE: loop exit
PB: predicated region body
PF: predicated region fallthrough
CT: control target
= control target key end

     0   :  { %20 = vsyncpa [#allocation3], 0  ;;  %s5194_s0 = inlined_call_operand.vmem [shape: f32[2,18,30], index: 0, kind: input, shape index: {}]   ;;  %s5195_s1 = inlined_call_operand.vmem [shape: bf16[30,128], index: 1, kind: input, shape index: {}]   ;;  %s5196_s2 = inlined_call_operand.vmem [shape: f32[1,128], index: 2, kind: input, shape index: {}]   ;;  %s5197_s3 = inlined_call_operand.vmem [shape: f32[1,128], index: 3, kind: input, shape index: {}]   ;;  %s5198_s4 = inlined_call_operand.vmem [shape: bf16[384,128], index: 4, kind: input, shape index: {}]   ;;  %s5199_s5 = inlined_call_operand.vmem [shape: f32[1,128], index: 5, kind: input, shape index: {}]   ;;  %s5200_s6 = inlined_call_operand.vmem [shape: f32[1,128], index: 6, kind: input, shape index: {}]   ;;  %s5201_s7 = inlined_call_operand.vmem [shape: bf16[384,256], index: 7, kind: input, shape index: {}]   ;;  %s5202_s8 = inlined_call_operand.vmem [shape: f32[1,256], index: 8, kind: input, shape index: {}]   ;;  %s5203_s9 = inlined_call_operand.vmem [shape: f32[1,256], index: 9, kind: input, shape index: {}]   ;;  %s5204_s10 = inlined_call_operand.hbm [shape: bf16[768,128], index: 10, kind: input, shape index: {}]   ;;  %s5205_s11 = inlined_call_operand.vmem [shape: f32[1,128], index: 11, kind: input, shape index: {}]   ;;  %s5206_s12 = inlined_call_operand.vmem [shape: f32[1,128], index: 12, kind: input, shape index: {}]   ;;  %s5207_s13 = inlined_call_operand.vmem [shape: bf16[128,8], index: 13, kind: input, shape index: {}]   ;;  %s5208_s14 = inlined_call_operand.vmem [shape: f32[1,8], index: 14, kind: input, shape index: {}]   ;;  %s5209_s15 = inlined_call_operand.hbm [shape: f32[2,8], index: 15, kind: output, shape index: {}]  }
   0x1   :  { %21 = vsyncpa [#allocation4], 0  ;;  %s46_s20 = sshll.u32 %s5204_s10, 4  ;;  %s4219_s21 = smov [#allocation2]   ;;  %s47_s20 = int_to_ptr.hbm [resolvable:$true] %s46_s20 }
   0x2   :  { %s48_s22 = sshll.u32 %s4219_s21, 4  ;;  %s4220_s23 = smov 64   ;;  %s49_s22 = int_to_ptr.vmem [resolvable:$true] %s48_s22 }
   0x3   :  { %s4221_s24 = smov 4  }
   0x4   :  { %54 = dma.hbm_to_vmem [thread:$0]  %s47_s20, 6144, %s49_s22, [#allocation3], %s4220_s23, %s4220_s23, %s4221_s24  }
   0x5   :  { %4215 = dma.done.wait [#allocation3], 6144  }
   0x6   :  { %4216 = vsyncadd [#allocation3], 4294961152  ;;  %v2849_v0 = vld [vmem:[%s5195_s1 + $0x8] sm:$0xf]  ;;  %v3827_v1 = vld [vmem:[%s5195_s1 + $0x8] sm:$0x70] }
   0x7   :  { %vm95_vm0 = vcmask 1046528   ;;  %v2850_v2 = vor.u32 %v3827_v1, %v2849_v0  ;;  %v3826_v3 = vld [vmem:[%s5195_s1] sm:$0xff]  ;;  %v69_v6 = vld [vmem:[%s5194_s0 + $0x8] sm:$0xff]  ;;  %vm88_vm1 = vcmask 244736   ;;  %v70_v8 = vld [vmem:[%s5194_s0 + $0x10] sm:$0x3] }
   0x8   :  { %v68_v4 = vld [vmem:[%s5194_s0] sm:$0xff]  ;;  %v72_v9 = vpack.c.bf16 %v70_v8, %v70_v8  ;;  %v3835_v10 = vld [vmem:[%s5198_s4 + $0x38] sm:$0xff]  ;;  %v3834_v12 = vld [vmem:[%s5198_s4 + $0x30] sm:$0xff]  ;;  %vm1450_vm3 = vcmask 57344  }
   0x9   :  { %v97_v5 = vsel %vm95_vm0, %v2850_v2, 0  ;;  %v71_v7 = vpack.c.bf16 %v69_v6, %v68_v4  ;;  %365 = vmatpush.bf16.msra.mxu1 %v3835_v10  ;;  %v3851_v11 = vld [vmem:[%s5198_s4 + $0xb8] sm:$0xff]  ;;  %v3850_v14 = vld [vmem:[%s5198_s4 + $0xb0] sm:$0xff]  ;;  %v3833_v15 = vld [vmem:[%s5198_s4 + $0x28] sm:$0xff] }
   0xa   :  { %105 = vmatpush.bf16.msra.mxu0 %v97_v5  ;;  %393 = vmatpush.bf16.msra.mxu3 %v3851_v11  ;;  %v3843_v13 = vld [vmem:[%s5198_s4 + $0x78] sm:$0xff]  ;;  %v3842_v16 = vld [vmem:[%s5198_s4 + $0x70] sm:$0xff]  ;;  %v3849_v17 = vld [vmem:[%s5198_s4 + $0xa8] sm:$0xff] }
   0xb   :  { %379 = vmatpush.bf16.msra.mxu2 %v3843_v13  ;;  %v3832_v18 = vld [vmem:[%s5198_s4 + $0x20] sm:$0xff]  ;;  %v3841_v19 = vld [vmem:[%s5198_s4 + $0x68] sm:$0xff]  ;;  %v3831_v21 = vld [vmem:[%s5198_s4 + $0x18] sm:$0xff] }
   0xc   :  { %v3848_v20 = vld [vmem:[%s5198_s4 + $0xa0] sm:$0xff]  ;;  %v3847_v23 = vld [vmem:[%s5198_s4 + $0x98] sm:$0xff]  ;;  %v3830_v24 = vld [vmem:[%s5198_s4 + $0x10] sm:$0xff] }
   0xd   :  { %366 = vmatpush.bf16.msra.mxu1 %v3834_v12  ;;  %v3840_v22 = vld [vmem:[%s5198_s4 + $0x60] sm:$0xff]  ;;  %v3839_v25 = vld [vmem:[%s5198_s4 + $0x58] sm:$0xff]  ;;  %v3846_v26 = vld [vmem:[%s5198_s4 + $0x90] sm:$0xff] }
   0xe   :  { %106 = vmatpush.bf16.msra.mxu0 %v3826_v3  ;;  %394 = vmatpush.bf16.msra.mxu3 %v3850_v14  ;;  %v3829_v27 = vld [vmem:[%s5198_s4 + $0x8] sm:$0xff]  ;;  %v3838_v28 = vld [vmem:[%s5198_s4 + $0x50] sm:$0xff]  ;;  %v3828_v30 = vld [vmem:[%s5198_s4] sm:$0xff] }
   0xf   :  { %380 = vmatpush.bf16.msra.mxu2 %v3842_v16  ;;  %v3845_v29 = vld [vmem:[%s5198_s4 + $0x88] sm:$0xff]  ;;  %v3844_v33 = vld [vmem:[%s5198_s4 + $0x80] sm:$0xff]  ;;  %v3007_v39 = vld [vmem:[%s5201_s7 + $0x70] sm:$0xf] }
  0x10   :  { %v3837_v31 = vld [vmem:[%s5198_s4 + $0x48] sm:$0xff]  ;;  %v4153_v34 = vld [vmem:[%s5196_s2] ss:$0 sm:$0xff]  ;;  %v3867_v40 = vld [vmem:[%s5201_s7 + $0x74] sm:$0xf0] }
  0x11   :  { %2851 = vmatmul.msk.bf16.vlgmr.msra.gmra.mxu0 %vm88_vm1, %v71_v7  ;;  %367 = vmatpush.bf16.msra.mxu1 %v3833_v15  ;;  %v3836_v35 = vld [vmem:[%s5198_s4 + $0x40] sm:$0xff]  ;;  %v3008_v43 = vor.u32 %v3867_v40, %v3007_v39  ;;  %v3865_v12 = vld [vmem:[%s5201_s7 + $0x64] sm:$0xf0]  ;;  %v3071_v14 = vld [vmem:[%s5201_s7 + $0xf0] sm:$0xf] }
  0x12   :  { %395 = vmatpush.bf16.msra.mxu3 %v3849_v17  ;;  %v4154_v37 = vld [vmem:[%s5197_s3] ss:$0 sm:$0xff]  ;;  %v3883_v15 = vld [vmem:[%s5201_s7 + $0xf4] sm:$0xf0]  ;;  %v2991_v16 = vld [vmem:[%s5201_s7 + $0x50] sm:$0xf] }
  0x13   :  { %381 = vmatpush.bf16.msra.mxu2 %v3841_v19  ;;  %736 = vmatpush.bf16.msrb.mxu0 %v3008_v43  ;;  %v2999_v11 = vld [vmem:[%s5201_s7 + $0x60] sm:$0xf]  ;;  %v3072_v17 = vor.u32 %v3883_v15, %v3071_v14  ;;  %v3001_v39 = vld [vmem:[%s5201_s7 + $0x68] sm:$0xf0]  ;;  %v3073_v14 = vld [vmem:[%s5201_s7 + $0xf8] sm:$0xf0] }
  0x14   :  { %v3000_v13 = vor.u32 %v3865_v12, %v2999_v11  ;;  %v2977_v11 = vld [vmem:[%s5201_s7 + $0x38] sm:$0xf0]  ;;  %v3882_v12 = vld [vmem:[%s5201_s7 + $0xf4] sm:$0xf]  ;;  %v3023_v15 = vld [vmem:[%s5201_s7 + $0x90] sm:$0xf] }
  0x15   :  { %368 = vmatpush.bf16.msra.mxu1 %v3832_v18  ;;  %v3863_v18 = vld [vmem:[%s5201_s7 + $0x54] sm:$0xf0] }
  0x16   :  { %396 = vmatpush.bf16.msra.mxu3 %v3848_v20  ;;  %v2992_v19 = vor.u32 %v3863_v18, %v2991_v16  ;;  %v3063_v20 = vld [vmem:[%s5201_s7 + $0xe0] sm:$0xf]  ;;  %v3871_v16 = vld [vmem:[%s5201_s7 + $0x94] sm:$0xf0] }
  0x17   :  { %382 = vmatpush.bf16.msra.mxu2 %v3840_v22  ;;  %737 = vmatpush.bf16.msrb.mxu0 %v3000_v13  ;;  %v3024_v18 = vor.u32 %v3871_v16, %v3023_v15  ;;  %v3870_v15 = vld [vmem:[%s5201_s7 + $0x94] sm:$0xf]  ;;  %v3025_v16 = vld [vmem:[%s5201_s7 + $0x98] sm:$0xf0] }
  0x19   :  { %369 = vmatpush.bf16.msra.mxu1 %v3831_v21  ;;  %v3881_v21 = vld [vmem:[%s5201_s7 + $0xe4] sm:$0xf0] }
  0x1a   :  { %397 = vmatpush.bf16.msra.mxu3 %v3847_v23  ;;  %v3064_v22 = vor.u32 %v3881_v21, %v3063_v20  ;;  %v2983_v23 = vld [vmem:[%s5201_s7 + $0x40] sm:$0xf]  ;;  %v3891_v20 = vld [vmem:[%s5201_s7 + $0x134] sm:$0xf0] }
  0x1b   :  { %383 = vmatpush.bf16.msra.mxu2 %v3839_v25  ;;  %738 = vmatpush.bf16.msrb.mxu0 %v2992_v19  ;;  %v3103_v19 = vld [vmem:[%s5201_s7 + $0x130] sm:$0xf] }
  0x1c   :  { %v3104_v21 = vor.u32 %v3891_v20, %v3103_v19  ;;  %v3097_v19 = vld [vmem:[%s5201_s7 + $0x128] sm:$0xf0]  ;;  %v3868_v20 = vld [vmem:[%s5201_s7 + $0x84] sm:$0xf] }
  0x1d   :  { %370 = vmatpush.bf16.msra.mxu1 %v3830_v24  ;;  %v3861_v24 = vld [vmem:[%s5201_s7 + $0x44] sm:$0xf0] }
  0x1e   :  { %398 = vmatpush.bf16.msra.mxu3 %v3846_v26  ;;  %v2984_v25 = vor.u32 %v3861_v24, %v2983_v23  ;;  %v3866_v26 = vld [vmem:[%s5201_s7 + $0x74] sm:$0xf]  ;;  %v2969_v23 = vld [vmem:[%s5201_s7 + $0x28] sm:$0xf0]  ;;  %v3880_v24 = vld [vmem:[%s5201_s7 + $0xe4] sm:$0xf] }
  0x1f   :  { %384 = vmatpush.bf16.msra.mxu2 %v3838_v28 }
  0x20   :  { %739 = vmatpush.bf16.msrb.mxu0 %v2984_v25 }
  0x21   :  { %2852 = vmatmul.msk.bf16.gmra.mxu0 %vm88_vm1, %v72_v9  ;;  %371 = vmatpush.bf16.msra.mxu1 %v3829_v27  ;;  %v3009_v27 = vld [vmem:[%s5201_s7 + $0x78] sm:$0xf0] }
  0x22   :  { %399 = vmatpush.bf16.msra.mxu3 %v3845_v29  ;;  %v3012_v28 = vor.u32 %v3866_v26, %v3009_v27  ;;  %v3055_v29 = vld [vmem:[%s5201_s7 + $0xd0] sm:$0xf]  ;;  %v3065_v26 = vld [vmem:[%s5201_s7 + $0xe8] sm:$0xf0]  ;;  %v3015_v27 = vld [vmem:[%s5201_s7 + $0x80] sm:$0xf] }
  0x23   :  { %385 = vmatpush.bf16.msra.mxu2 %v3837_v31 }
  0x25   :  { %372 = vmatpush.bf16.msra.mxu1 %v3828_v30  ;;  %v3879_v30 = vld [vmem:[%s5201_s7 + $0xd4] sm:$0xf0] }
  0x26   :  { %400 = vmatpush.bf16.msra.mxu3 %v3844_v33  ;;  %v3056_v31 = vor.u32 %v3879_v30, %v3055_v29  ;;  %v3899_v33 = vld [vmem:[%s5201_s7 + $0x174] sm:$0xf0]  ;;  %v3068_v29 = vor.u32 %v3880_v24, %v3065_v26  ;;  %v4156_v24 = vld [vmem:[%s5200_s6] ss:$0 sm:$0xff]  ;;  %v3089_v26 = vld [vmem:[%s5201_s7 + $0x118] sm:$0xf0] }
  0x27   :  { %386 = vmatpush.bf16.msra.mxu2 %v3836_v35  ;;  %v2975_v35 = vld [vmem:[%s5201_s7 + $0x30] sm:$0xf] }
  0x29   :  { %750 = vmatpush.bf16.msrb.mxu1 %v3072_v17  ;;  %v3076_v17 = vor.u32 %v3882_v12, %v3073_v14 }
  0x2a   :  { %778 = vmatpush.bf16.msrb.mxu3 %v3012_v28  ;;  %v3869_v28 = vld [vmem:[%s5201_s7 + $0x84] sm:$0xf0] }
  0x2b   :  { %v3016_v30 = vor.u32 %v3869_v28, %v3015_v27 }
  0x2d   :  { %751 = vmatpush.bf16.msrb.mxu1 %v3064_v22  ;;  %v3856_v22 = vld [vmem:[%s5201_s7 + $0x24] sm:$0xf] }
  0x2e   :  { %v2972_v25 = vor.u32 %v3856_v22, %v2969_v23 }
  0x31   :  { %752 = vmatpush.bf16.msrb.mxu1 %v3056_v31  ;;  %v3095_v31 = vld [vmem:[%s5201_s7 + $0x120] sm:$0xf] }
  0x8e   :  { %v108_v32 = vpop.f32.mrf.mxu0 }
  0x8f   :  { %v121_v36 = vmul.f32 %v4153_v34, %v108_v32  ;;  %v3135_v32 = vld [vmem:[%s5201_s7 + $0x170] sm:$0xf] }
  0x91   :  { %v128_v41 = vadd.f32 %v4154_v37, %v121_v36  ;;  %v3859_v36 = vld [vmem:[%s5201_s7 + $0x34] sm:$0xf0] }
  0x93   :  { %v131_v45 = vmax.f32 %v128_v41, 0.0  ;;  %v3047_v41 = vld [vmem:[%s5201_s7 + $0xc0] sm:$0xf] }
  0x95   :  { %v137_v49 = vrot.slane %v131_v45, 1 }
  0x96   :  { %v110_v38 = vpop.f32.mrf.mxu0 }
  0x97   :  { %v122_v42 = vmul.f32 %v4153_v34, %v110_v38  ;;  %v3864_v38 = vld [vmem:[%s5201_s7 + $0x64] sm:$0xf] }
  0x98   :  { %v3004_v40 = vor.u32 %v3864_v38, %v3001_v39  ;;  %v2961_v38 = vld [vmem:[%s5201_s7 + $0x18] sm:$0xf0]  ;;  %v3878_v39 = vld [vmem:[%s5201_s7 + $0xd4] sm:$0xf] }
  0x99   :  { %v129_v44 = vadd.f32 %v4154_v37, %v122_v42  ;;  %v3877_v42 = vld [vmem:[%s5201_s7 + $0xc4] sm:$0xf0] }
  0x9a   :  { %v3048_v43 = vor.u32 %v3877_v42, %v3047_v41  ;;  %779 = vmatpush.bf16.msrb.mxu3 %v3004_v40  ;;  %v3057_v41 = vld [vmem:[%s5201_s7 + $0xd8] sm:$0xf0] }
  0x9b   :  { %v132_v46 = vmax.f32 %v129_v44, 0.0  ;;  %v3127_v44 = vld [vmem:[%s5201_s7 + $0x160] sm:$0xf]  ;;  %v3060_v42 = vor.u32 %v3878_v39, %v3057_v41 }
  0x9c   :  { %753 = vmatpush.bf16.msrb.mxu1 %v3048_v43  ;;  %v3087_v43 = vld [vmem:[%s5201_s7 + $0x110] sm:$0xf] }
  0x9d   :  { %v138_v47 = vrot.slane %v132_v46, 1 }
  0x9e   :  { %v113_v48 = vpop.f32.mrf.mxu0 }
  0x9f   :  { %v123_v50 = vmul.f32 %v4153_v34, %v113_v48  ;;  %v139_v51 = vsel %vm95_vm0, %v137_v49, %v138_v47  ;;  %v3136_v34 = vor.u32 %v3899_v33, %v3135_v32  ;;  %v3857_v48 = vld [vmem:[%s5201_s7 + $0x24] sm:$0xf0]  ;;  %v3898_v33 = vld [vmem:[%s5201_s7 + $0x174] sm:$0xf] }
  0xa0   :  { %v145_v54 = vmax.f32 %v131_v45, %v139_v51  ;;  %v3897_v45 = vld [vmem:[%s5201_s7 + $0x164] sm:$0xf0]  ;;  %v2993_v51 = vld [vmem:[%s5201_s7 + $0x58] sm:$0xf0] }
  0xa1   :  { %v130_v52 = vadd.f32 %v4154_v37, %v123_v50  ;;  %v2976_v37 = vor.u32 %v3859_v36, %v2975_v35  ;;  %764 = vmatpush.bf16.msrb.mxu2 %v3136_v34  ;;  %v3862_v50 = vld [vmem:[%s5201_s7 + $0x54] sm:$0xf]  ;;  %v3889_v32 = vld [vmem:[%s5201_s7 + $0x124] sm:$0xf0]  ;;  %v3137_v35 = vld [vmem:[%s5201_s7 + $0x178] sm:$0xf0] }
  0xa2   :  { %v148_v60 = vpack.c.bf16 %v145_v54, %v145_v54  ;;  %v3875_v54 = vld [vmem:[%s5201_s7 + $0xb4] sm:$0xf0]  ;;  %v3096_v34 = vor.u32 %v3889_v32, %v3095_v31  ;;  %v3140_v36 = vor.u32 %v3898_v33, %v3137_v35 }
  0xa3   :  { %v133_v53 = vmax.f32 %v130_v52, 0.0  ;;  %740 = vmatpush.bf16.msrb.mxu0 %v2976_v37  ;;  %v2996_v52 = vor.u32 %v3862_v50, %v2993_v51  ;;  %v3854_v37 = vld [vmem:[%s5201_s7 + $0x14] sm:$0xf]  ;;  %v2953_v50 = vld [vmem:[%s5201_s7 + $0x8] sm:$0xf0] }
  0xa4   :  { %v153_v0 = vunpack.c.l.b16 %v148_v60  ;;  %v3855_v60 = vld [vmem:[%s5201_s7 + $0x14] sm:$0xf0]  ;;  %v2964_v40 = vor.u32 %v3854_v37, %v2961_v38  ;;  %v3876_v51 = vld [vmem:[%s5201_s7 + $0xc4] sm:$0xf]  ;;  %v3081_v37 = vld [vmem:[%s5201_s7 + $0x108] sm:$0xf0] }
  0xa5   :  { %v140_v55 = vrot.slane %v133_v53, 1  ;;  %780 = vmatpush.bf16.msrb.mxu3 %v2996_v52 }
  0xa6   :  { %v115_v56 = vpop.f32.mrf.mxu0 }
  0xa7   :  { %v141_v57 = vsel %vm95_vm0, %v138_v47, %v140_v55  ;;  %v147_v58 = vmax.f32 %v133_v53, %v140_v55  ;;  %v2967_v47 = vld [vmem:[%s5201_s7 + $0x20] sm:$0xf]  ;;  %v3039_v53 = vld [vmem:[%s5201_s7 + $0xb0] sm:$0xf] }
  0xa8   :  { %v146_v59 = vmax.f32 %v132_v46, %v141_v57  ;;  %v3128_v46 = vor.u32 %v3897_v45, %v3127_v44  ;;  %v2968_v49 = vor.u32 %v3857_v48, %v2967_v47  ;;  %v3040_v55 = vor.u32 %v3875_v54, %v3039_v53  ;;  %v3119_v56 = vld [vmem:[%s5201_s7 + $0x150] sm:$0xf]  ;;  %v3895_v57 = vld [vmem:[%s5201_s7 + $0x154] sm:$0xf0]  ;;  %v3896_v45 = vld [vmem:[%s5201_s7 + $0x164] sm:$0xf] }
  0xa9   :  { %v150_v61 = vpack.c.bf16 %v147_v58, %v147_v58  ;;  %v3120_v58 = vor.u32 %v3895_v57, %v3119_v56  ;;  %v3887_v44 = vld [vmem:[%s5201_s7 + $0x114] sm:$0xf0]  ;;  %v3129_v47 = vld [vmem:[%s5201_s7 + $0x168] sm:$0xf0]  ;;  %v3079_v54 = vld [vmem:[%s5201_s7 + $0x100] sm:$0xf] }
  0xaa   :  { %v149_v62 = vpack.c.bf16 %v146_v59, %v146_v59  ;;  %765 = vmatpush.bf16.msrb.mxu2 %v3128_v46  ;;  %741 = vmatpush.bf16.msrb.mxu0 %v2968_v49  ;;  %v2959_v59 = vld [vmem:[%s5201_s7 + $0x10] sm:$0xf]  ;;  %v3088_v46 = vor.u32 %v3887_v44, %v3087_v43  ;;  %v3132_v48 = vor.u32 %v3896_v45, %v3129_v47  ;;  %v3852_v49 = vld [vmem:[%s5201_s7 + $0x4] sm:$0xf]  ;;  %v3049_v53 = vld [vmem:[%s5201_s7 + $0xc8] sm:$0xf0] }
  0xab   :  { %v166_v63 = vunpack.c.l.b16 %v150_v61  ;;  %754 = vmatpush.bf16.msrb.mxu1 %v3040_v55  ;;  %v2960_v61 = vor.u32 %v3855_v60, %v2959_v59  ;;  %v2956_v52 = vor.u32 %v3852_v49, %v2953_v50  ;;  %v3885_v55 = vld [vmem:[%s5201_s7 + $0x104] sm:$0xf0]  ;;  %v3052_v56 = vor.u32 %v3876_v51, %v3049_v53  ;;  %v3121_v59 = vld [vmem:[%s5201_s7 + $0x158] sm:$0xf0] }
  0xac   :  { %v154_v1 = vunpack.c.l.b16 %v149_v62  ;;  %v3860_v62 = vld [vmem:[%s5201_s7 + $0x44] sm:$0xf]  ;;  %v3080_v57 = vor.u32 %v3885_v55, %v3079_v54 }
  0xad   :  { %v167_v2 = vpack.c.b16 %v166_v63, %v166_v63  ;;  %v2985_v63 = vld [vmem:[%s5201_s7 + $0x48] sm:$0xf0] }
  0xae   :  { %v155_v3 = vpack.c.b16 %v154_v1, %v153_v0  ;;  %766 = vmatpush.bf16.msrb.mxu2 %v3120_v58  ;;  %v2988_v0 = vor.u32 %v3860_v62, %v2985_v63  ;;  %v3031_v1 = vld [vmem:[%s5201_s7 + $0xa0] sm:$0xf]  ;;  %742 = vmatpush.bf16.msrb.mxu0 %v2960_v61  ;;  %v3894_v58 = vld [vmem:[%s5201_s7 + $0x154] sm:$0xf]  ;;  %v3041_v62 = vld [vmem:[%s5201_s7 + $0xb8] sm:$0xf0] }
  0xaf   :  { %v170_v4 = vrot.slane %v167_v2, 1  ;;  %v3873_v2 = vld [vmem:[%s5201_s7 + $0xa4] sm:$0xf0]  ;;  %v3124_v60 = vor.u32 %v3894_v58, %v3121_v59  ;;  %v3874_v61 = vld [vmem:[%s5201_s7 + $0xb4] sm:$0xf]  ;;  %v3915_v58 = vld [vmem:[#allocation2 + $0x78] sm:$0xff] }
  0xb0   :  { %373 = vmatmul.bf16.vlgmr.msra.gmra.mxu1 %v155_v3  ;;  %v169_v5 = vrot.slane %v155_v3, 1  ;;  %v160_v6 = vshll.u32 %v155_v3, 16  ;;  %v158_v8 = vshrl.u32 %v155_v3, 16  ;;  %v3032_v3 = vor.u32 %v3873_v2, %v3031_v1  ;;  %781 = vmatpush.bf16.msrb.mxu3 %v2988_v0  ;;  %v3892_v1 = vld [vmem:[%s5201_s7 + $0x144] sm:$0xf]  ;;  %v3906_v59 = vld [vmem:[#allocation2 + $0x30] sm:$0xff] }
  0xb1   :  { %v3044_v63 = vor.u32 %v3874_v61, %v3041_v62  ;;  %v3113_v2 = vld [vmem:[%s5201_s7 + $0x148] sm:$0xf0] }
  0xb2   :  { %v171_v7 = vsel %vm95_vm0, %v169_v5, %v170_v4  ;;  %v162_v9 = vrot.slane %v160_v6, 1  ;;  %v3111_v4 = vld [vmem:[%s5201_s7 + $0x140] sm:$0xf]  ;;  %v3893_v5 = vld [vmem:[%s5201_s7 + $0x144] sm:$0xf0]  ;;  %755 = vmatpush.bf16.msrb.mxu1 %v3032_v3  ;;  %v3116_v3 = vor.u32 %v3892_v1, %v3113_v2  ;;  %v3903_v1 = vld [vmem:[#allocation2 + $0x18] sm:$0xff] }
  0xb3   :  { %401 = vmatmul.bf16.vlgmr.msra.gmra.mxu3 %v171_v7  ;;  %v3112_v6 = vor.u32 %v3893_v5, %v3111_v4  ;;  %v2951_v7 = vld [vmem:[%s5201_s7] sm:$0xf]  ;;  %v3905_v61 = vld [vmem:[#allocation2 + $0x28] sm:$0xff]  ;;  %v3911_v2 = vld [vmem:[#allocation2 + $0x58] sm:$0xff] }
  0xb4   :  { %v163_v10 = vor.u32 %v162_v9, %v158_v8  ;;  %v3853_v8 = vld [vmem:[%s5201_s7 + $0x4] sm:$0xf0] }
  0xb5   :  { %v2952_v9 = vor.u32 %v3853_v8, %v2951_v7  ;;  %767 = vmatpush.bf16.msrb.mxu2 %v3112_v6  ;;  %v3872_v6 = vld [vmem:[%s5201_s7 + $0xa4] sm:$0xf]  ;;  %v3033_v7 = vld [vmem:[%s5201_s7 + $0xa8] sm:$0xf0] }
  0xb6   :  { %387 = vmatmul.bf16.vlgmr.msra.gmra.mxu2 %v163_v10  ;;  %v3858_v10 = vld [vmem:[%s5201_s7 + $0x34] sm:$0xf]  ;;  %756 = vmatpush.bf16.msrb.mxu1 %v3024_v18  ;;  %v3028_v18 = vor.u32 %v3870_v15, %v3025_v16  ;;  %v3913_v62 = vld [vmem:[#allocation2 + $0x68] sm:$0xff]  ;;  %v3908_v15 = vld [vmem:[#allocation2 + $0x40] sm:$0xff] }
  0xb7   :  { %v2980_v13 = vor.u32 %v3858_v10, %v2977_v11  ;;  %743 = vmatpush.bf16.msrb.mxu0 %v2952_v9  ;;  %v3036_v9 = vor.u32 %v3872_v6, %v3033_v7  ;;  %v3890_v10 = vld [vmem:[%s5201_s7 + $0x134] sm:$0xf]  ;;  %v3105_v11 = vld [vmem:[%s5201_s7 + $0x138] sm:$0xf0] }
  0xb8   :  { %v3108_v14 = vor.u32 %v3890_v10, %v3105_v11  ;;  %v3910_v6 = vld [vmem:[#allocation2 + $0x50] sm:$0xff]  ;;  %v3909_v10 = vld [vmem:[#allocation2 + $0x48] sm:$0xff]  ;;  %v3939_v16 = vld [vmem:[#allocation2 + $0x138] sm:$0xff] }
  0xb9   :  { %782 = vmatpush.bf16.msrb.mxu3 %v2980_v13  ;;  %768 = vmatpush.bf16.msrb.mxu2 %v3104_v21  ;;  %v4155_v13 = vld [vmem:[%s5199_s5] ss:$0 sm:$0xff]  ;;  %v3017_v21 = vld [vmem:[%s5201_s7 + $0x88] sm:$0xf0]  ;;  %v3922_v7 = vld [vmem:[#allocation2 + $0xb0] sm:$0xff] }
  0xba   :  { %757 = vmatpush.bf16.msrb.mxu1 %v3016_v30  ;;  %v3921_v11 = vld [vmem:[#allocation2 + $0xa8] sm:$0xff] }
  0xbb   :  { %792 = vmatpush.bf16.msra.mxu0 %v3076_v17  ;;  %v3888_v17 = vld [vmem:[%s5201_s7 + $0x124] sm:$0xf] }
  0xbc   :  { %v3100_v22 = vor.u32 %v3888_v17, %v3097_v19  ;;  %v3947_v17 = vld [vmem:[#allocation2 + $0x178] sm:$0xff]  ;;  %v3928_v19 = vld [vmem:[#allocation2 + $0xe0] sm:$0xff] }
  0xbd   :  { %783 = vmatpush.bf16.msrb.mxu3 %v2972_v25  ;;  %769 = vmatpush.bf16.msrb.mxu2 %v3096_v34  ;;  %v3886_v25 = vld [vmem:[%s5201_s7 + $0x114] sm:$0xf] }
  0xbe   :  { %806 = vmatpush.bf16.msra.mxu1 %v3140_v36  ;;  %v3092_v32 = vor.u32 %v3886_v25, %v3089_v26  ;;  %v3884_v36 = vld [vmem:[%s5201_s7 + $0x104] sm:$0xf] }
  0xbf   :  { %793 = vmatpush.bf16.msra.mxu0 %v3068_v29  ;;  %v3020_v29 = vor.u32 %v3868_v20, %v3017_v21  ;;  %v3938_v20 = vld [vmem:[#allocation2 + $0x130] sm:$0xff] }
  0xc0   :  { %v3946_v21 = vld [vmem:[#allocation2 + $0x170] sm:$0xff] }
  0xc1   :  { %784 = vmatpush.bf16.msrb.mxu3 %v2964_v40  ;;  %770 = vmatpush.bf16.msrb.mxu2 %v3088_v46  ;;  %v3084_v40 = vor.u32 %v3884_v36, %v3081_v37 }
  0xc2   :  { %807 = vmatpush.bf16.msra.mxu1 %v3132_v48 }
  0xc3   :  { %794 = vmatpush.bf16.msra.mxu0 %v3060_v42 }
  0xc5   :  { %785 = vmatpush.bf16.msrb.mxu3 %v2956_v52  ;;  %771 = vmatpush.bf16.msrb.mxu2 %v3080_v57  ;;  %v3907_v57 = vld [vmem:[#allocation2 + $0x38] sm:$0xff] }
  0xc6   :  { %808 = vmatpush.bf16.msra.mxu1 %v3124_v60  ;;  %v3914_v60 = vld [vmem:[#allocation2 + $0x70] sm:$0xff] }
  0xc7   :  { %795 = vmatpush.bf16.msra.mxu0 %v3052_v56 }
  0xc9   :  { %1278 = vmatpush.bf16.msra.mxu2 %v3907_v57  ;;  %1292 = vmatpush.bf16.msra.mxu3 %v3915_v58  ;;  %v3933_v57 = vld [vmem:[#allocation2 + $0x108] sm:$0xff] }
  0xca   :  { %809 = vmatpush.bf16.msra.mxu1 %v3116_v3  ;;  %v3923_v3 = vld [vmem:[#allocation2 + $0xb8] sm:$0xff]  ;;  %v3941_v58 = vld [vmem:[#allocation2 + $0x148] sm:$0xff] }
  0xcb   :  { %796 = vmatpush.bf16.msra.mxu0 %v3044_v63  ;;  %v3904_v63 = vld [vmem:[#allocation2 + $0x20] sm:$0xff] }
  0xcd   :  { %1279 = vmatpush.bf16.msra.mxu2 %v3906_v59  ;;  %1293 = vmatpush.bf16.msra.mxu3 %v3914_v60 }
  0xce   :  { %810 = vmatpush.bf16.msra.mxu1 %v3108_v14  ;;  %v3900_v14 = vld [vmem:[#allocation2] sm:$0xff] }
  0xcf   :  { %797 = vmatpush.bf16.msra.mxu0 %v3036_v9  ;;  %v3901_v9 = vld [vmem:[#allocation2 + $0x8] sm:$0xff] }
  0xd1   :  { %1280 = vmatpush.bf16.msra.mxu2 %v3905_v61  ;;  %1294 = vmatpush.bf16.msra.mxu3 %v3913_v62 }
  0xd2   :  { %811 = vmatpush.bf16.msra.mxu1 %v3100_v22 }
  0xd3   :  { %798 = vmatpush.bf16.msra.mxu0 %v3028_v18  ;;  %v3920_v18 = vld [vmem:[#allocation2 + $0xa0] sm:$0xff] }
  0xd5   :  { %1281 = vmatpush.bf16.msra.mxu2 %v3904_v63 }
  0xd6   :  { %812 = vmatpush.bf16.msra.mxu1 %v3092_v32  ;;  %v3944_v32 = vld [vmem:[#allocation2 + $0x160] sm:$0xff] }
  0xd7   :  { %799 = vmatpush.bf16.msra.mxu0 %v3020_v29  ;;  %v3918_v29 = vld [vmem:[#allocation2 + $0x90] sm:$0xff] }
  0xd9   :  { %1282 = vmatpush.bf16.msra.mxu2 %v3903_v1  ;;  %v3932_v1 = vld [vmem:[#allocation2 + $0x100] sm:$0xff] }
  0xda   :  { %813 = vmatpush.bf16.msra.mxu1 %v3084_v40  ;;  %v3935_v40 = vld [vmem:[#allocation2 + $0x118] sm:$0xff] }
 0x12d   :  { %v374_v0 = vpop.f32.mrf.mxu1 }
 0x135   :  { %v376_v27 = vpop.f32.mrf.mxu1 }
 0x136   :  { %v402_v4 = vpop.f32.mrf.mxu3 }
 0x139   :  { %v388_v5 = vpop.f32.mrf.mxu2 }
 0x13a   :  { %v389_v8 = vadd.f32 %v388_v5, %v374_v0  ;;  %v3912_v0 = vld [vmem:[#allocation2 + $0x60] sm:$0xff]  ;;  %v3902_v5 = vld [vmem:[#allocation2 + $0x10] sm:$0xff] }
 0x13b   :  { %1295 = vmatpush.bf16.msra.mxu3 %v3912_v0  ;;  %1283 = vmatpush.bf16.msra.mxu2 %v3902_v5 }
 0x13c   :  { %v403_v12 = vadd.f32 %v402_v4, %v389_v8  ;;  %v3931_v4 = vld [vmem:[#allocation2 + $0xf8] sm:$0xff]  ;;  %v3930_v8 = vld [vmem:[#allocation2 + $0xf0] sm:$0xff] }
 0x13e   :  { %v411_v23 = vmul.f32 %v4155_v13, %v403_v12  ;;  %v404_v31 = vpop.f32.mrf.mxu3  ;;  %v3929_v12 = vld [vmem:[#allocation2 + $0xe8] sm:$0xff] }
 0x13f   :  { %1296 = vmatpush.bf16.msra.mxu3 %v3911_v2  ;;  %1284 = vmatpush.bf16.msra.mxu2 %v3901_v9  ;;  %v3940_v2 = vld [vmem:[#allocation2 + $0x140] sm:$0xff] }
 0x140   :  { %v417_v33 = vadd.f32 %v4156_v24, %v411_v23  ;;  %v3919_v23 = vld [vmem:[#allocation2 + $0x98] sm:$0xff] }
 0x141   :  { %v390_v28 = vpop.f32.mrf.mxu2 }
 0x142   :  { %v391_v30 = vadd.f32 %v390_v28, %v376_v27  ;;  %v419_v38 = vmax.f32 %v417_v33, 0.0  ;;  %v3937_v27 = vld [vmem:[#allocation2 + $0x128] sm:$0xff] }
 0x143   :  { %1297 = vmatpush.bf16.msra.mxu3 %v3910_v6  ;;  %1285 = vmatpush.bf16.msra.mxu2 %v3900_v14  ;;  %v3945_v28 = vld [vmem:[#allocation2 + $0x168] sm:$0xff] }
 0x144   :  { %v405_v34 = vadd.f32 %v404_v31, %v391_v30  ;;  %v423_v42 = vrot.slane %v419_v38, 1  ;;  %v3926_v30 = vld [vmem:[#allocation2 + $0xd0] sm:$0xff]  ;;  %v3936_v31 = vld [vmem:[#allocation2 + $0x120] sm:$0xff]  ;;  %v3917_v33 = vld [vmem:[#allocation2 + $0x88] sm:$0xff] }
 0x146   :  { %v412_v35 = vmul.f32 %v4155_v13, %v405_v34  ;;  %v3925_v34 = vld [vmem:[#allocation2 + $0xc8] sm:$0xff] }
 0x147   :  { %1298 = vmatpush.bf16.msra.mxu3 %v3909_v10 }
 0x148   :  { %v418_v39 = vadd.f32 %v4156_v24, %v412_v35  ;;  %v3927_v24 = vld [vmem:[#allocation2 + $0xd8] sm:$0xff] }
 0x14a   :  { %v420_v41 = vmax.f32 %v418_v39, 0.0 }
 0x14b   :  { %1299 = vmatpush.bf16.msra.mxu3 %v3908_v15 }
 0x14c   :  { %v424_v43 = vrot.slane %v420_v41, 1 }
 0x14e   :  { %v425_v44 = vsel %vm95_vm0, %v423_v42, %v424_v43  ;;  %v429_v45 = vmax.f32 %v420_v41, %v424_v43  ;;  %v3943_v41 = vld [vmem:[#allocation2 + $0x158] sm:$0xff]  ;;  %v820_v43 = vld [vmem:[%s5202_s8] sm:$0x3] }
 0x14f   :  { %v428_v46 = vmax.f32 %v419_v38, %v425_v44  ;;  %v3916_v44 = vld [vmem:[#allocation2 + $0x80] sm:$0xff] }
 0x150   :  { %v431_v47 = vpack.c.bf16 %v429_v45, %v429_v45  ;;  %v3924_v45 = vld [vmem:[#allocation2 + $0xc0] sm:$0xff] }
 0x151   :  { %v430_v48 = vpack.c.bf16 %v428_v46, %v428_v46 }
 0x152   :  { %v435_v49 = vunpack.c.l.b16 %v431_v47  ;;  %v3934_v47 = vld [vmem:[#allocation2 + $0x110] sm:$0xff] }
 0x153   :  { %v434_v50 = vunpack.c.l.b16 %v430_v48  ;;  %v3942_v48 = vld [vmem:[#allocation2 + $0x150] sm:$0xff] }
 0x155   :  { %v436_v51 = vpack.c.b16 %v435_v49, %v434_v50  ;;  %v822_v50 = vperm.slane %v820_v43, 0 }
 0x157   :  { %744 = vmatmul.bf16.vlgmr.msrb.gmra.mxu0 %v436_v51  ;;  %786 = vmatmul.bf16.vlgmr.msrb.gmra.mxu3 %v436_v51  ;;  %v446_v52 = vrot.slane %v436_v51, 1  ;;  %v441_v53 = vshll.u32 %v436_v51, 16  ;;  %v439_v54 = vshrl.u32 %v436_v51, 16 }
 0x158   :  { %1306 = vmatpush.bf16.msrb.mxu0 %v3923_v3  ;;  %1348 = vmatpush.bf16.msrb.mxu3 %v3947_v17 }
 0x159   :  { %772 = vmatmul.bf16.vlgmr.msrb.gmra.mxu2 %v446_v52  ;;  %v443_v55 = vrot.slane %v441_v53, 1 }
 0x15a   :  { %1334 = vmatpush.bf16.msrb.mxu2 %v3939_v16 }
 0x15b   :  { %v444_v56 = vor.u32 %v443_v55, %v439_v54 }
 0x15c   :  { %1307 = vmatpush.bf16.msrb.mxu0 %v3922_v7  ;;  %1349 = vmatpush.bf16.msrb.mxu3 %v3946_v21 }
 0x15d   :  { %758 = vmatmul.bf16.vlgmr.msrb.gmra.mxu1 %v444_v56 }
 0x15e   :  { %1320 = vmatpush.bf16.msrb.mxu1 %v3931_v4  ;;  %1335 = vmatpush.bf16.msrb.mxu2 %v3938_v20 }
 0x160   :  { %1308 = vmatpush.bf16.msrb.mxu0 %v3921_v11  ;;  %1350 = vmatpush.bf16.msrb.mxu3 %v3945_v28 }
 0x162   :  { %1321 = vmatpush.bf16.msrb.mxu1 %v3930_v8  ;;  %1336 = vmatpush.bf16.msrb.mxu2 %v3937_v27 }
 0x164   :  { %1309 = vmatpush.bf16.msrb.mxu0 %v3920_v18  ;;  %1351 = vmatpush.bf16.msrb.mxu3 %v3944_v32 }
 0x166   :  { %1322 = vmatpush.bf16.msrb.mxu1 %v3929_v12  ;;  %1337 = vmatpush.bf16.msrb.mxu2 %v3936_v31 }
 0x167   :  { %800 = vmatmul.bf16.vlgmr.msra.gmra.mxu0 %v444_v56  ;;  %v823_v56 = vperm.slane %v820_v43, 1  ;;  %v4140_v43 = vld [vmem:[%s5207_s13 + $0x38] sm:$0xff]  }
 0x168   :  { %1310 = vmatpush.bf16.msrb.mxu0 %v3919_v23  ;;  %1352 = vmatpush.bf16.msrb.mxu3 %v3943_v41 }
 0x16a   :  { %1323 = vmatpush.bf16.msrb.mxu1 %v3928_v19  ;;  %1338 = vmatpush.bf16.msrb.mxu2 %v3935_v40 }
 0x16c   :  { %1311 = vmatpush.bf16.msrb.mxu0 %v3918_v29  ;;  %1353 = vmatpush.bf16.msrb.mxu3 %v3942_v48 }
 0x16d   :  { %814 = vmatmul.bf16.vlgmr.msra.gmra.mxu1 %v446_v52  ;;  %v830_v52 = vld [vmem:[%s5203_s9] sm:$0x3] }
 0x16e   :  { %1324 = vmatpush.bf16.msrb.mxu1 %v3927_v24  ;;  %1339 = vmatpush.bf16.msrb.mxu2 %v3934_v47  ;;  %v832_v60 = vperm.slane %v830_v52, 0  ;;  %v833_v0 = vperm.slane %v830_v52, 1 }
 0x170   :  { %1312 = vmatpush.bf16.msrb.mxu0 %v3917_v33  ;;  %1354 = vmatpush.bf16.msrb.mxu3 %v3941_v58 }
 0x172   :  { %1325 = vmatpush.bf16.msrb.mxu1 %v3926_v30  ;;  %1340 = vmatpush.bf16.msrb.mxu2 %v3933_v57  ;;  %v4136_v57 = vld [vmem:[%s5207_s13 + $0x18] sm:$0xff]  }
 0x173   :  { %v4085_v58 = vunpack.c.h.bf16 %v4136_v57 }
 0x174   :  { %1313 = vmatpush.bf16.msrb.mxu0 %v3916_v44  ;;  %1355 = vmatpush.bf16.msrb.mxu3 %v3940_v2  ;;  %v4101_v44 = vunpack.c.h.bf16 %v4140_v43 }
 0x176   :  { %1326 = vmatpush.bf16.msrb.mxu1 %v3925_v34  ;;  %1341 = vmatpush.bf16.msrb.mxu2 %v3932_v1 }
 0x178   :  { %1430 = vmatpush.msra.mxu0 %v4101_v44 }
 0x17a   :  { %1327 = vmatpush.bf16.msrb.mxu1 %v3924_v45  ;;  %v4100_v45 = vunpack.c.l.bf16 %v4140_v43 }
 0x17c   :  { %1431 = vmatpush.msra.mxu0 %v4100_v45 }
 0x1d4   :  { %v745_v13 = vpop.f32.mrf.mxu0 }
 0x1da   :  { %v759_v22 = vpop.f32.mrf.mxu1  ;;  %v787_v42 = vpop.f32.mrf.mxu3 }
 0x1db   :  { %v760_v39 = vadd.f32 %v759_v22, %v745_v13 }
 0x1dc   :  { %v747_v25 = vpop.f32.mrf.mxu0  ;;  %v773_v26 = vpop.f32.mrf.mxu2 }
 0x1dd   :  { %v774_v49 = vadd.f32 %v773_v26, %v760_v39 }
 0x1df   :  { %v826_v59 = vmul.f32 %v822_v50, %v774_v49  ;;  %v4138_v49 = vld [vmem:[%s5207_s13 + $0x28] sm:$0xff]  }
 0x1e1   :  { %v836_v4 = vadd.f32 %v832_v60, %v826_v59 }
 0x1e2   :  { %v761_v35 = vpop.f32.mrf.mxu1  ;;  %v789_v3 = vpop.f32.mrf.mxu3 }
 0x1e3   :  { %v762_v36 = vadd.f32 %v761_v35, %v747_v25  ;;  %v840_v10 = vmax.f32 %v836_v4, 0.0 }
 0x1e4   :  { %v775_v37 = vpop.f32.mrf.mxu2  ;;  %v801_v38 = vpop.f32.mrf.mxu0 }
 0x1e5   :  { %v776_v46 = vadd.f32 %v775_v37, %v762_v36  ;;  %v802_v51 = vadd.f32 %v801_v38, %v787_v42  ;;  %v848_v15 = vrot.slane %v840_v10, 1 }
 0x1e7   :  { %v828_v54 = vmul.f32 %v822_v50, %v776_v46  ;;  %v4139_v46 = vld [vmem:[%s5207_s13 + $0x30] sm:$0xff]   ;;  %v4093_v50 = vunpack.c.h.bf16 %v4138_v49 }
 0x1e8   :  { %v4097_v47 = vunpack.c.h.bf16 %v4139_v46  ;;  %v4096_v48 = vunpack.c.l.bf16 %v4139_v46 }
 0x1e9   :  { %v838_v62 = vadd.f32 %v832_v60, %v828_v54  ;;  %v4137_v54 = vld [vmem:[%s5207_s13 + $0x20] sm:$0xff]  }
 0x1ea   :  { %v815_v53 = vpop.f32.mrf.mxu1  ;;  %1432 = vmatpush.msra.mxu0 %v4097_v47 }
 0x1eb   :  { %v816_v55 = vadd.f32 %v815_v53, %v802_v51  ;;  %v842_v7 = vmax.f32 %v838_v62, 0.0  ;;  %v4092_v53 = vunpack.c.l.bf16 %v4138_v49 }
 0x1ec   :  { %v803_v61 = vpop.f32.mrf.mxu0  ;;  %1433 = vmatpush.msra.mxu0 %v4096_v48 }
 0x1ed   :  { %v827_v63 = vmul.f32 %v823_v56, %v816_v55  ;;  %v804_v5 = vadd.f32 %v803_v61, %v789_v3  ;;  %v849_v12 = vrot.slane %v842_v7, 1  ;;  %v4089_v55 = vunpack.c.h.bf16 %v4137_v54  ;;  %v4134_v3 = vld [vmem:[%s5207_s13 + $0x8] sm:$0xff]  }
 0x1ee   :  { %1434 = vmatpush.msra.mxu0 %v4093_v50 }
 0x1ef   :  { %v837_v8 = vadd.f32 %v833_v0, %v827_v63  ;;  %v850_v17 = vsel %vm95_vm0, %v848_v15, %v849_v12  ;;  %v860_v20 = vmax.f32 %v842_v7, %v849_v12  ;;  %v4084_v63 = vunpack.c.l.bf16 %v4136_v57  ;;  %v4071_v7 = vld [vmem:[%s5207_s13] sm:$0xff]  }
 0x1f0   :  { %v858_v23 = vmax.f32 %v840_v10, %v850_v17  ;;  %1435 = vmatpush.msra.mxu0 %v4092_v53  ;;  %v3334_v57 = vld [vmem:[%s5194_s0 + $0x20] sm:$0xff] }
 0x1f1   :  { %v841_v13 = vmax.f32 %v837_v8, 0.0  ;;  %v4076_v8 = vunpack.c.l.bf16 %v4134_v3 }
 0x1f2   :  { %v817_v6 = vpop.f32.mrf.mxu1  ;;  %1436 = vmatpush.msra.mxu0 %v4089_v55 }
 0x1f3   :  { %v818_v9 = vadd.f32 %v817_v6, %v804_v5  ;;  %v851_v18 = vrot.slane %v841_v13, 1  ;;  %v4077_v6 = vunpack.c.h.bf16 %v4134_v3  ;;  %v3964_v3 = vld [vmem:[%s5198_s4 + $0x70] sm:$0xff] }
 0x1f5   :  { %v829_v11 = vmul.f32 %v823_v56, %v818_v9  ;;  %v4088_v56 = vunpack.c.l.bf16 %v4137_v54 }
 0x1f7   :  { %v839_v14 = vadd.f32 %v833_v0, %v829_v11  ;;  %1437 = vmatpush.msra.mxu0 %v4088_v56  ;;  %v4135_v0 = vld [vmem:[%s5207_s13 + $0x10] sm:$0xff]   ;;  %v3333_v56 = vld [vmem:[%s5194_s0 + $0x18] sm:$0xff] }
 0x1f8   :  { %v4081_v1 = vunpack.c.h.bf16 %v4135_v0  ;;  %v4080_v2 = vunpack.c.l.bf16 %v4135_v0  ;;  %v3965_v0 = vld [vmem:[%s5198_s4 + $0x78] sm:$0xff] }
 0x1f9   :  { %v843_v16 = vmax.f32 %v839_v14, 0.0  ;;  %1438 = vmatpush.msra.mxu0 %v4085_v58  ;;  %v1456_v58 = vpack.c.bf16 %v3334_v57, %v3333_v56 }
 0x1fb   :  { %v852_v19 = vrot.slane %v843_v16, 1  ;;  %1439 = vmatpush.msra.mxu0 %v4084_v63  ;;  %v3956_v63 = vld [vmem:[%s5198_s4 + $0x30] sm:$0xff] }
 0x1fd   :  { %v853_v21 = vsel %vm95_vm0, %v851_v18, %v852_v19  ;;  %v861_v22 = vmax.f32 %v843_v16, %v852_v19  ;;  %1440 = vmatpush.msra.mxu0 %v4081_v1  ;;  %v4072_v16 = vunpack.c.l.bf16 %v4071_v7  ;;  %v4157_v19 = vld [vmem:[%s5205_s11] ss:$0 sm:$0xff]  ;;  %v3972_v1 = vld [vmem:[%s5198_s4 + $0xb0] sm:$0xff] }
 0x1fe   :  { %v859_v24 = vmax.f32 %v841_v13, %v853_v21  ;;  %v4073_v13 = vunpack.c.h.bf16 %v4071_v7  ;;  %v3949_v21 = vld [vmem:[%s5195_s1 + $0x8] sm:$0x70]  ;;  %v3970_v7 = vld [vmem:[%s5198_s4 + $0xa0] sm:$0xff] }
 0x1ff   :  { %v863_v25 = vpack.c.bf16 %v861_v22, %v860_v20  ;;  %1441 = vmatpush.msra.mxu0 %v4080_v2  ;;  %v3342_v20 = vld [vmem:[%s5195_s1 + $0x8] sm:$0xf] }
 0x200   :  { %v862_v26 = vpack.c.bf16 %v859_v24, %v858_v23  ;;  %v3343_v22 = vor.u32 %v3949_v21, %v3342_v20  ;;  %v3955_v2 = vld [vmem:[%s5198_s4 + $0x28] sm:$0xff]  ;;  %v3950_v20 = vld [vmem:[%s5198_s4] sm:$0xff] }
 0x201   :  { %v868_v27 = vunpack.c.l.b16 %v863_v25  ;;  %v869_v28 = vunpack.c.h.b16 %v863_v25  ;;  %1442 = vmatpush.msra.mxu0 %v4077_v6  ;;  %v3963_v6 = vld [vmem:[%s5198_s4 + $0x68] sm:$0xff] }
 0x202   :  { %v866_v29 = vunpack.c.l.b16 %v862_v26  ;;  %v867_v30 = vunpack.c.h.b16 %v862_v26  ;;  %v4158_v26 = vld [vmem:[%s5206_s12] ss:$0 sm:$0xff] }
 0x203   :  { %1443 = vmatpush.msra.mxu0 %v4076_v8  ;;  %v3953_v8 = vld [vmem:[%s5198_s4 + $0x18] sm:$0xff] }
 0x204   :  { %v870_v31 = vpack.c.b16 %v868_v27, %v866_v29  ;;  %v871_v32 = vpack.c.b16 %v869_v28, %v867_v30  ;;  %v1480_v27 = vsel %vm95_vm0, %v3343_v22, 0  ;;  %v4222_v29 = vmov 8.0   ;;  %v3948_v30 = vld [vmem:[%s5195_s1] sm:$0xff]  ;;  %v3959_v22 = vld [vmem:[%s5198_s4 + $0x48] sm:$0xff] }
 0x205   :  { %1444 = vmatpush.msra.mxu0 %v4073_v13  ;;  %4165 = vrcp.f32 %v4222_v29  ;;  %v3500_v29 = vld [vmem:[%s5201_s7 + $0x70] sm:$0xf] }
 0x206   :  { %1286 = vmatmul.bf16.vlgmr.msra.gmra.mxu2 %v870_v31  ;;  %1300 = vmatmul.bf16.vlgmr.msra.gmra.mxu3 %v871_v32  ;;  %v877_v33 = vshll.u32 %v870_v31, 16  ;;  %v884_v34 = vshll.u32 %v871_v32, 16  ;;  %v875_v35 = vshrl.u32 %v870_v31, 16  ;;  %v882_v37 = vshrl.u32 %v871_v32, 16 }
 0x207   :  { %v890_v41 = vrot.slane %v870_v31, 1  ;;  %v891_v42 = vrot.slane %v871_v32, 1  ;;  %1445 = vmatpush.msra.mxu0 %v4072_v16  ;;  %1761 = vmatpush.bf16.msra.mxu2 %v3965_v0  ;;  %v3968_v16 = vld [vmem:[%s5198_s4 + $0x90] sm:$0xff] }
 0x208   :  { %v879_v36 = vrot.slane %v877_v33, 1  ;;  %v886_v38 = vrot.slane %v884_v34, 1 }
 0x20a   :  { %v880_v39 = vor.u32 %v879_v36, %v875_v35  ;;  %v887_v40 = vor.u32 %v886_v38, %v882_v37 }
 0x20b   :  { %v4166_v36 = vpop.eup %4165  ;;  %1762 = vmatpush.bf16.msra.mxu2 %v3964_v3  ;;  %v3987_v3 = vld [vmem:[%s5201_s7 + $0x64] sm:$0xf0] }
 0x20c   :  { %1314 = vmatmul.bf16.vlgmr.msrb.gmra.mxu0 %v880_v39  ;;  %1328 = vmatmul.bf16.vlgmr.msrb.gmra.mxu1 %v887_v40  ;;  %v1390_v40 = vmul.f32 8.0, %v4166_v36  ;;  %vm1394_vm2 = vweird.f32 %v4166_v36 }
 0x20d   :  { %1488 = vmatpush.bf16.msrb.mxu0 %v1480_v27  ;;  %v4160_v27 = vld [vmem:[%s5197_s3] ss:$0 sm:$0xff] }
 0x20e   :  { %v1391_v44 = vsub.f32 1.0, %v1390_v40 }
 0x20f   :  { %1763 = vmatpush.bf16.msra.mxu2 %v3963_v6  ;;  %v4005_v6 = vld [vmem:[%s5201_s7 + $0xf4] sm:$0xf0] }
 0x210   :  { %v1392_v47 = vmul.f32 %v4166_v36, %v1391_v44 }
 0x211   :  { %1489 = vmatpush.bf16.msrb.mxu0 %v3948_v30  ;;  %v3989_v30 = vld [vmem:[%s5201_s7 + $0x74] sm:$0xf0] }
 0x212   :  { %v1393_v50 = vadd.f32 %v4166_v36, %v1392_v47 }
 0x214   :  { %v4753_v53 = vsel %vm1394_vm2, %v4166_v36, %v1393_v50 }
 0x216   :  { %1342 = vmatmul.bf16.vlgmr.msrb.gmra.mxu2 %v890_v41  ;;  %1356 = vmatmul.bf16.vlgmr.msrb.gmra.mxu3 %v891_v42 }
 0x289   :  { %v1287_v51 = vpop.f32.mrf.mxu2  ;;  %v1301_v52 = vpop.f32.mrf.mxu3 }
 0x28a   :  { %v1302_v59 = vadd.f32 %v1301_v52, %v1287_v51  ;;  %v1315_v60 = vpop.f32.mrf.mxu0  ;;  %v1329_v5 = vpop.f32.mrf.mxu1 }
 0x28c   :  { %v1316_v4 = vadd.f32 %v1315_v60, %v1302_v59  ;;  %v3335_v59 = vld [vmem:[%s5194_s0 + $0x28] sm:$0x3] }
 0x28d   :  { %v1457_v60 = vpack.c.bf16 %v3335_v59, %v3335_v59 }
 0x28e   :  { %v1330_v9 = vadd.f32 %v1329_v5, %v1316_v4  ;;  %v3971_v4 = vld [vmem:[%s5198_s4 + $0xa8] sm:$0xff]  ;;  %v3954_v5 = vld [vmem:[%s5198_s4 + $0x20] sm:$0xff] }
 0x291   :  { %v1289_v61 = vpop.f32.mrf.mxu2  ;;  %v1303_v62 = vpop.f32.mrf.mxu3 }
 0x292   :  { %v1304_v10 = vadd.f32 %v1303_v62, %v1289_v61  ;;  %v1317_v15 = vpop.f32.mrf.mxu0  ;;  %v1331_v23 = vpop.f32.mrf.mxu1  ;;  %v3957_v61 = vld [vmem:[%s5198_s4 + $0x38] sm:$0xff] }
 0x293   :  { %1747 = vmatpush.bf16.msra.mxu1 %v3957_v61  ;;  %v3973_v62 = vld [vmem:[%s5198_s4 + $0xb8] sm:$0xff] }
 0x294   :  { %v1318_v17 = vadd.f32 %v1317_v15, %v1304_v10  ;;  %1775 = vmatpush.bf16.msra.mxu3 %v3973_v62  ;;  %v3969_v10 = vld [vmem:[%s5198_s4 + $0x98] sm:$0xff] }
 0x296   :  { %v1332_v24 = vadd.f32 %v1331_v23, %v1318_v17  ;;  %v3951_v17 = vld [vmem:[%s5198_s4 + $0x8] sm:$0xff]  ;;  %v4159_v23 = vld [vmem:[%s5196_s2] ss:$0 sm:$0xff]  ;;  %s4223_s2 = smov [#allocation5]  }
 0x297   :  { %1748 = vmatpush.bf16.msra.mxu1 %v3956_v63  ;;  %s2831_s18 = sshll.u32 %s4223_s2, 4  ;;  %s2832_s18 = int_to_ptr.vmem [resolvable:$true] %s2831_s18 }
 0x298   :  { %1776 = vmatpush.bf16.msra.mxu3 %v3972_v1 }
 0x299   :  { %v1343_v11 = vpop.f32.mrf.mxu2  ;;  %v1357_v12 = vpop.f32.mrf.mxu3 }
 0x29a   :  { %v1344_v14 = vadd.f32 %v1343_v11, %v1330_v9  ;;  %v3962_v9 = vld [vmem:[%s5198_s4 + $0x60] sm:$0xff] }
 0x29b   :  { %1749 = vmatpush.bf16.msra.mxu1 %v3955_v2  ;;  %v1429_v11 = vld [vmem:[%s5208_s14] sm:$0x1]  ;;  %1764 = vmatpush.bf16.msra.mxu2 %v3962_v9 }
 0x29c   :  { %v1358_v18 = vadd.f32 %v1357_v12, %v1344_v14  ;;  %1777 = vmatpush.bf16.msra.mxu3 %v3971_v4  ;;  %v3952_v12 = vld [vmem:[%s5198_s4 + $0x10] sm:$0xff]  ;;  %v3961_v14 = vld [vmem:[%s5198_s4 + $0x58] sm:$0xff]  ;;  %v3492_v2 = vld [vmem:[%s5201_s7 + $0x60] sm:$0xf] }
 0x29d   :  { %v3564_v4 = vld [vmem:[%s5201_s7 + $0xf0] sm:$0xf] }
 0x29e   :  { %v1366_v25 = vmul.f32 %v4157_v19, %v1358_v18  ;;  %v3960_v18 = vld [vmem:[%s5198_s4 + $0x50] sm:$0xff]  ;;  %v3565_v9 = vor.u32 %v4005_v6, %v3564_v4  ;;  %v3566_v6 = vld [vmem:[%s5201_s7 + $0xf8] sm:$0xf0] }
 0x29f   :  { %1750 = vmatpush.bf16.msra.mxu1 %v3954_v5  ;;  %1765 = vmatpush.bf16.msra.mxu2 %v3961_v14  ;;  %v3493_v5 = vor.u32 %v3987_v3, %v3492_v2  ;;  %v3476_v14 = vld [vmem:[%s5201_s7 + $0x40] sm:$0xf]  ;;  %v3980_v2 = vld [vmem:[%s5201_s7 + $0x34] sm:$0xf]  ;;  %v3470_v3 = vld [vmem:[%s5201_s7 + $0x38] sm:$0xf0] }
 0x2a0   :  { %v1372_v33 = vadd.f32 %v4158_v26, %v1366_v25  ;;  %1778 = vmatpush.bf16.msra.mxu3 %v3970_v7  ;;  %v3958_v25 = vld [vmem:[%s5198_s4 + $0x40] sm:$0xff]  ;;  %v3484_v7 = vld [vmem:[%s5201_s7 + $0x50] sm:$0xf]  ;;  %v4004_v4 = vld [vmem:[%s5201_s7 + $0xf4] sm:$0xf] }
 0x2a1   :  { %v1345_v28 = vpop.f32.mrf.mxu2  ;;  %v1359_v32 = vpop.f32.mrf.mxu3 }
 0x2a2   :  { %v1346_v31 = vadd.f32 %v1345_v28, %v1332_v24  ;;  %v1374_v37 = vmax.f32 %v1372_v33, 0.0  ;;  %v3966_v24 = vld [vmem:[%s5198_s4 + $0x80] sm:$0xff]  ;;  %v3501_v33 = vor.u32 %v3989_v30, %v3500_v29  ;;  %v3494_v30 = vld [vmem:[%s5201_s7 + $0x68] sm:$0xf0] }
 0x2a3   :  { %1751 = vmatpush.bf16.msra.mxu1 %v3953_v8  ;;  %1766 = vmatpush.bf16.msra.mxu2 %v3960_v18  ;;  %v3985_v8 = vld [vmem:[%s5201_s7 + $0x54] sm:$0xf0]  ;;  %v3502_v18 = vld [vmem:[%s5201_s7 + $0x78] sm:$0xf0]  ;;  %v3986_v29 = vld [vmem:[%s5201_s7 + $0x64] sm:$0xf] }
 0x2a4   :  { %v1360_v34 = vadd.f32 %v1359_v32, %v1346_v31  ;;  %v1378_v41 = vrot.slane %v1374_v37, 1  ;;  %1779 = vmatpush.bf16.msra.mxu3 %v3969_v10  ;;  %v3485_v10 = vor.u32 %v3985_v8, %v3484_v7  ;;  %v3516_v7 = vld [vmem:[%s5201_s7 + $0x90] sm:$0xf]  ;;  %v3993_v8 = vld [vmem:[%s5201_s7 + $0x94] sm:$0xf0] }
 0x2a6   :  { %v1367_v35 = vmul.f32 %v4157_v19, %v1360_v34  ;;  %v3967_v19 = vld [vmem:[%s5198_s4 + $0x88] sm:$0xff]  ;;  %s2833_s4 = sshll.u32 %s5209_s15, 4  ;;  %s2834_s4 = int_to_ptr.hbm [resolvable:$true] %s2833_s4 }
 0x2a7   :  { %1752 = vmatpush.bf16.msra.mxu1 %v3952_v12  ;;  %1767 = vmatpush.bf16.msra.mxu2 %v3959_v22  ;;  %v4003_v12 = vld [vmem:[%s5201_s7 + $0xe4] sm:$0xf0] }
 0x2a8   :  { %v1373_v38 = vadd.f32 %v4158_v26, %v1367_v35  ;;  %1780 = vmatpush.bf16.msra.mxu3 %v3968_v16 }
 0x2aa   :  { %v1375_v39 = vmax.f32 %v1373_v38, 0.0 }
 0x2ab   :  { %1753 = vmatpush.bf16.msra.mxu1 %v3951_v17  ;;  %1768 = vmatpush.bf16.msra.mxu2 %v3958_v25  ;;  %v3988_v17 = vld [vmem:[%s5201_s7 + $0x74] sm:$0xf] }
 0x2ac   :  { %v1379_v42 = vrot.slane %v1375_v39, 1  ;;  %1781 = vmatpush.bf16.msra.mxu3 %v3967_v19  ;;  %v3505_v19 = vor.u32 %v3988_v17, %v3502_v18  ;;  %v3558_v18 = vld [vmem:[%s5201_s7 + $0xe8] sm:$0xf0] }
 0x2ae   :  { %v1380_v43 = vsel %vm95_vm0, %v1378_v41, %v1379_v42 }
 0x2af   :  { %v1382_v45 = vmax.f32 %v1374_v37, %v1380_v43  ;;  %1754 = vmatpush.bf16.msra.mxu1 %v3950_v20  ;;  %v3548_v20 = vld [vmem:[%s5201_s7 + $0xd0] sm:$0xf] }
 0x2b0   :  { %1782 = vmatpush.bf16.msra.mxu3 %v3966_v24  ;;  %v4021_v24 = vld [vmem:[%s5201_s7 + $0x174] sm:$0xf0] }
 0x2b1   :  { %v1383_v46 = vrot.slane %v1382_v45, 4 }
 0x2b3   :  { %v1384_v48 = vadd.f32 %v1383_v46, %v1382_v45  ;;  %2132 = vmatpush.bf16.msrb.mxu1 %v3565_v9  ;;  %v3569_v9 = vor.u32 %v4004_v4, %v3566_v6  ;;  %v4161_v4 = vld [vmem:[%s5199_s5] ss:$0 sm:$0xff]  ;;  %v3598_v6 = vld [vmem:[%s5201_s7 + $0x138] sm:$0xf0] }
 0x2b4   :  { %2160 = vmatpush.bf16.msrb.mxu3 %v3505_v19  ;;  %v3508_v19 = vld [vmem:[%s5201_s7 + $0x80] sm:$0xf] }
 0x2b5   :  { %v1385_v49 = vrot.slane %v1384_v48, 2 }
 0x2b7   :  { %v1386_v51 = vadd.f32 %v1385_v49, %v1384_v48 }
 0x2b9   :  { %v1387_v52 = vrot.slane %v1386_v51, 1 }
 0x2bb   :  { %v1388_v54 = vadd.f32 %v1387_v52, %v1386_v51 }
 0x2bd   :  { %v1396_v55 = vmul.f32 %v4753_v53, %v1388_v54 }
 0x2bf   :  { %1446 = vmatmul.f32.vlgmr.msra.gmra.mxu0 %v1396_v55 }
 0x2c0   :  { %2118 = vmatpush.bf16.msra.mxu0 %v3501_v33  ;;  %v3999_v33 = vld [vmem:[%s5201_s7 + $0xc4] sm:$0xf0] }
 0x2c4   :  { %2119 = vmatpush.bf16.msra.mxu0 %v3493_v5  ;;  %v3473_v5 = vor.u32 %v3980_v2, %v3470_v3 }
 0x2c7   :  { %3344 = vmatmul.msk.bf16.vlgmr.msrb.gmra.mxu0 %vm88_vm1, %v1456_v58 }
 0x2c8   :  { %2120 = vmatpush.bf16.msra.mxu0 %v3485_v10  ;;  %v3517_v10 = vor.u32 %v3993_v8, %v3516_v7  ;;  %v3992_v8 = vld [vmem:[%s5201_s7 + $0x94] sm:$0xf] }
 0x2d7   :  { %3345 = vmatmul.msk.bf16.gmra.mxu0 %vm88_vm1, %v1457_v60 }
 0x33c   :  { %v1447_v13 = vpop.f32.mrf.mxu0 }
 0x33d   :  { %v1448_v15 = vadd.f32 %v1447_v13, %v1429_v11  ;;  %v3556_v11 = vld [vmem:[%s5201_s7 + $0xe0] sm:$0xf] }
 0x33e   :  { %v3557_v13 = vor.u32 %v4003_v12, %v3556_v11  ;;  %v3596_v11 = vld [vmem:[%s5201_s7 + $0x130] sm:$0xf]  ;;  %v4013_v12 = vld [vmem:[%s5201_s7 + $0x134] sm:$0xf0] }
 0x33f   :  { %1451 = vst.msk [vmem:[#allocation5] sm:$0x1] %vm1450_vm3, %v1448_v15  ;;  %v3983_v15 = vld [vmem:[%s5201_s7 + $0x44] sm:$0xf0] }
 0x340   :  { %2133 = vmatpush.bf16.msrb.mxu1 %v3557_v13  ;;  %v3477_v16 = vor.u32 %v3983_v15, %v3476_v14  ;;  %v3597_v13 = vor.u32 %v4013_v12, %v3596_v11  ;;  %v3978_v14 = vld [vmem:[%s5201_s7 + $0x24] sm:$0xf]  ;;  %v3462_v15 = vld [vmem:[%s5201_s7 + $0x28] sm:$0xf0] }
 0x341   :  { %v3465_v17 = vor.u32 %v3978_v14, %v3462_v15  ;;  %v3590_v12 = vld [vmem:[%s5201_s7 + $0x128] sm:$0xf0] }
 0x342   :  { %2121 = vmatpush.bf16.msra.mxu0 %v3477_v16  ;;  %v4002_v16 = vld [vmem:[%s5201_s7 + $0xe4] sm:$0xf]  ;;  %v3510_v14 = vld [vmem:[%s5201_s7 + $0x88] sm:$0xf0] }
 0x344   :  { %v1491_v21 = vpop.f32.mrf.mxu0 }
 0x345   :  { %v1504_v26 = vmul.f32 %v4159_v23, %v1491_v21  ;;  %v4001_v21 = vld [vmem:[%s5201_s7 + $0xd4] sm:$0xf0] }
 0x346   :  { %v3549_v22 = vor.u32 %v4001_v21, %v3548_v20  ;;  %v3991_v20 = vld [vmem:[%s5201_s7 + $0x84] sm:$0xf0]  ;;  %v3561_v21 = vor.u32 %v4002_v16, %v3558_v18  ;;  %v4162_v16 = vld [vmem:[%s5200_s6] ss:$0 sm:$0xff] }
 0x347   :  { %v1511_v31 = vadd.f32 %v4160_v27, %v1504_v26  ;;  %v3468_v26 = vld [vmem:[%s5201_s7 + $0x30] sm:$0xf] }
 0x348   :  { %2134 = vmatpush.bf16.msrb.mxu1 %v3549_v22  ;;  %v3509_v22 = vor.u32 %v3991_v20, %v3508_v19  ;;  %v4008_v20 = vld [vmem:[%s5201_s7 + $0x114] sm:$0xf] }
 0x349   :  { %v1514_v35 = vmax.f32 %v1511_v31, 0.0  ;;  %v3497_v31 = vor.u32 %v3986_v29, %v3494_v30  ;;  %v3976_v29 = vld [vmem:[%s5201_s7 + $0x14] sm:$0xf]  ;;  %v3454_v30 = vld [vmem:[%s5201_s7 + $0x18] sm:$0xf0] }
 0x34b   :  { %v1520_v39 = vrot.slane %v1514_v35, 1  ;;  %2161 = vmatpush.bf16.msrb.mxu3 %v3497_v31  ;;  %v4000_v31 = vld [vmem:[%s5201_s7 + $0xd4] sm:$0xf] }
 0x34c   :  { %v1493_v28 = vpop.f32.mrf.mxu0 }
 0x34d   :  { %v1505_v32 = vmul.f32 %v4159_v23, %v1493_v28 }
 0x34f   :  { %v1512_v34 = vadd.f32 %v4160_v27, %v1505_v32  ;;  %v3540_v32 = vld [vmem:[%s5201_s7 + $0xc0] sm:$0xf] }
 0x351   :  { %v1515_v36 = vmax.f32 %v1512_v34, 0.0  ;;  %v3541_v34 = vor.u32 %v3999_v33, %v3540_v32  ;;  %v3457_v32 = vor.u32 %v3976_v29, %v3454_v30  ;;  %v3550_v33 = vld [vmem:[%s5201_s7 + $0xd8] sm:$0xf0]  ;;  %v4006_v29 = vld [vmem:[%s5201_s7 + $0x104] sm:$0xf] }
 0x352   :  { %v3574_v30 = vld [vmem:[%s5201_s7 + $0x108] sm:$0xf0] }
 0x353   :  { %v1521_v37 = vrot.slane %v1515_v36, 1  ;;  %2135 = vmatpush.bf16.msrb.mxu1 %v3541_v34  ;;  %v3553_v34 = vor.u32 %v4000_v31, %v3550_v33  ;;  %v3577_v33 = vor.u32 %v4006_v29, %v3574_v30  ;;  %v4047_v29 = vld [vmem:[#allocation2 + $0xc8] sm:$0xff] }
 0x354   :  { %v1496_v38 = vpop.f32.mrf.mxu0 }
 0x355   :  { %v1506_v40 = vmul.f32 %v4159_v23, %v1496_v38  ;;  %v1522_v41 = vsel %vm95_vm0, %v1520_v39, %v1521_v37  ;;  %v3628_v23 = vld [vmem:[%s5201_s7 + $0x170] sm:$0xf]  ;;  %v3460_v38 = vld [vmem:[%s5201_s7 + $0x20] sm:$0xf]  ;;  %v3979_v39 = vld [vmem:[%s5201_s7 + $0x24] sm:$0xf0] }
 0x356   :  { %v1528_v44 = vmax.f32 %v1514_v35, %v1522_v41  ;;  %v3629_v25 = vor.u32 %v4021_v24, %v3628_v23  ;;  %v3620_v35 = vld [vmem:[%s5201_s7 + $0x160] sm:$0xf]  ;;  %v3984_v41 = vld [vmem:[%s5201_s7 + $0x54] sm:$0xf]  ;;  %v4011_v24 = vld [vmem:[%s5201_s7 + $0x124] sm:$0xf0] }
 0x357   :  { %v1513_v42 = vadd.f32 %v4160_v27, %v1506_v40  ;;  %v3981_v27 = vld [vmem:[%s5201_s7 + $0x34] sm:$0xf0]  ;;  %v3461_v40 = vor.u32 %v3979_v39, %v3460_v38  ;;  %v3588_v23 = vld [vmem:[%s5201_s7 + $0x120] sm:$0xf]  ;;  %v3622_v39 = vld [vmem:[%s5201_s7 + $0x168] sm:$0xf0] }
 0x358   :  { %v1531_v50 = vpack.c.bf16 %v1528_v44, %v1528_v44  ;;  %v3469_v28 = vor.u32 %v3981_v27, %v3468_v26  ;;  %2146 = vmatpush.bf16.msrb.mxu2 %v3629_v25  ;;  %v3532_v44 = vld [vmem:[%s5201_s7 + $0xb0] sm:$0xf]  ;;  %v4020_v25 = vld [vmem:[%s5201_s7 + $0x174] sm:$0xf]  ;;  %v3589_v26 = vor.u32 %v4011_v24, %v3588_v23  ;;  %v3630_v27 = vld [vmem:[%s5201_s7 + $0x178] sm:$0xf0] }
 0x359   :  { %v1516_v43 = vmax.f32 %v1513_v42, 0.0  ;;  %v3486_v42 = vld [vmem:[%s5201_s7 + $0x58] sm:$0xf0] }
 0x35a   :  { %v1536_v55 = vunpack.c.l.b16 %v1531_v50  ;;  %2122 = vmatpush.bf16.msra.mxu0 %v3469_v28  ;;  %v3452_v50 = vld [vmem:[%s5201_s7 + $0x10] sm:$0xf]  ;;  %v3633_v28 = vor.u32 %v4020_v25, %v3630_v27 }
 0x35b   :  { %v1523_v45 = vrot.slane %v1516_v43, 1 }
 0x35c   :  { %v1498_v46 = vpop.f32.mrf.mxu0 }
 0x35d   :  { %v1524_v47 = vsel %vm95_vm0, %v1521_v37, %v1523_v45  ;;  %v1530_v48 = vmax.f32 %v1516_v43, %v1523_v45  ;;  %v3489_v43 = vor.u32 %v3984_v41, %v3486_v42  ;;  %v3997_v45 = vld [vmem:[%s5201_s7 + $0xb4] sm:$0xf0]  ;;  %v3974_v41 = vld [vmem:[%s5201_s7 + $0x4] sm:$0xf]  ;;  %v3446_v42 = vld [vmem:[%s5201_s7 + $0x8] sm:$0xf0] }
 0x35e   :  { %v1529_v49 = vmax.f32 %v1515_v36, %v1524_v47  ;;  %v4019_v36 = vld [vmem:[%s5201_s7 + $0x164] sm:$0xf0]  ;;  %2123 = vmatpush.bf16.msra.mxu0 %v3461_v40  ;;  %v3533_v46 = vor.u32 %v3997_v45, %v3532_v44  ;;  %v3612_v47 = vld [vmem:[%s5201_s7 + $0x150] sm:$0xf]  ;;  %v3449_v44 = vor.u32 %v3974_v41, %v3446_v42  ;;  %v3542_v45 = vld [vmem:[%s5201_s7 + $0xc8] sm:$0xf0] }
 0x35f   :  { %v1533_v51 = vpack.c.bf16 %v1530_v48, %v1530_v48  ;;  %v3621_v37 = vor.u32 %v4019_v36, %v3620_v35  ;;  %v4017_v48 = vld [vmem:[%s5201_s7 + $0x154] sm:$0xf0]  ;;  %2162 = vmatpush.bf16.msrb.mxu3 %v3489_v43  ;;  %v3580_v35 = vld [vmem:[%s5201_s7 + $0x110] sm:$0xf]  ;;  %v3998_v43 = vld [vmem:[%s5201_s7 + $0xc4] sm:$0xf] }
 0x360   :  { %v1532_v52 = vpack.c.bf16 %v1529_v49, %v1529_v49  ;;  %v3613_v49 = vor.u32 %v4017_v48, %v3612_v47  ;;  %2136 = vmatpush.bf16.msrb.mxu1 %v3533_v46  ;;  %v4009_v36 = vld [vmem:[%s5201_s7 + $0x114] sm:$0xf0]  ;;  %v3572_v46 = vld [vmem:[%s5201_s7 + $0x100] sm:$0xf]  ;;  %v4007_v47 = vld [vmem:[%s5201_s7 + $0x104] sm:$0xf0]  ;;  %v3545_v48 = vor.u32 %v3998_v43, %v3542_v45 }
 0x361   :  { %v1549_v54 = vunpack.c.l.b16 %v1533_v51  ;;  %2147 = vmatpush.bf16.msrb.mxu2 %v3621_v37  ;;  %v3977_v51 = vld [vmem:[%s5201_s7 + $0x14] sm:$0xf0]  ;;  %v4018_v37 = vld [vmem:[%s5201_s7 + $0x164] sm:$0xf]  ;;  %v3581_v38 = vor.u32 %v4009_v36, %v3580_v35 }
 0x362   :  { %v1537_v56 = vunpack.c.l.b16 %v1532_v52  ;;  %v3453_v52 = vor.u32 %v3977_v51, %v3452_v50  ;;  %v3625_v40 = vor.u32 %v4018_v37, %v3622_v39  ;;  %v4016_v50 = vld [vmem:[%s5201_s7 + $0x154] sm:$0xf]  ;;  %v3614_v51 = vld [vmem:[%s5201_s7 + $0x158] sm:$0xf0] }
 0x363   :  { %v1550_v57 = vpack.c.b16 %v1549_v54, %v1549_v54  ;;  %v3982_v54 = vld [vmem:[%s5201_s7 + $0x44] sm:$0xf] }
 0x364   :  { %v1538_v58 = vpack.c.b16 %v1537_v56, %v1536_v55  ;;  %v3478_v55 = vld [vmem:[%s5201_s7 + $0x48] sm:$0xf0]  ;;  %2124 = vmatpush.bf16.msra.mxu0 %v3453_v52  ;;  %v3617_v52 = vor.u32 %v4016_v50, %v3614_v51  ;;  %v4029_v50 = vld [vmem:[#allocation2 + $0x38] sm:$0xff] }
 0x365   :  { %v1552_v59 = vrot.slane %v1550_v57, 1  ;;  %2148 = vmatpush.bf16.msrb.mxu2 %v3613_v49  ;;  %v3481_v56 = vor.u32 %v3982_v54, %v3478_v55  ;;  %v3524_v57 = vld [vmem:[%s5201_s7 + $0xa0] sm:$0xf]  ;;  %v3573_v49 = vor.u32 %v4007_v47, %v3572_v46  ;;  %v3996_v54 = vld [vmem:[%s5201_s7 + $0xb4] sm:$0xf]  ;;  %v4037_v51 = vld [vmem:[#allocation2 + $0x78] sm:$0xff] }
 0x366   :  { %1755 = vmatmul.bf16.vlgmr.msra.gmra.mxu1 %v1538_v58  ;;  %v1551_v60 = vrot.slane %v1538_v58, 1  ;;  %v1543_v61 = vshll.u32 %v1538_v58, 16  ;;  %v1541_v63 = vshrl.u32 %v1538_v58, 16  ;;  %v3995_v58 = vld [vmem:[%s5201_s7 + $0xa4] sm:$0xf0] }
 0x367   :  { %2163 = vmatpush.bf16.msrb.mxu3 %v3481_v56  ;;  %v3534_v55 = vld [vmem:[%s5201_s7 + $0xb8] sm:$0xf0] }
 0x368   :  { %v1553_v62 = vsel %vm95_vm0, %v1551_v60, %v1552_v59  ;;  %v1545_v0 = vrot.slane %v1543_v61, 1  ;;  %v3525_v59 = vor.u32 %v3995_v58, %v3524_v57  ;;  %v3604_v60 = vld [vmem:[%s5201_s7 + $0x140] sm:$0xf]  ;;  %v4015_v61 = vld [vmem:[%s5201_s7 + $0x144] sm:$0xf0]  ;;  %v3537_v57 = vor.u32 %v3996_v54, %v3534_v55  ;;  %v4036_v54 = vld [vmem:[#allocation2 + $0x70] sm:$0xff] }
 0x369   :  { %1783 = vmatmul.bf16.vlgmr.msra.gmra.mxu3 %v1553_v62  ;;  %v3605_v62 = vor.u32 %v4015_v61, %v3604_v60  ;;  %v4014_v58 = vld [vmem:[%s5201_s7 + $0x144] sm:$0xf]  ;;  %v4027_v55 = vld [vmem:[#allocation2 + $0x28] sm:$0xff] }
 0x36a   :  { %v1546_v1 = vor.u32 %v1545_v0, %v1541_v63  ;;  %v3444_v63 = vld [vmem:[%s5201_s7] sm:$0xf]  ;;  %v3975_v0 = vld [vmem:[%s5201_s7 + $0x4] sm:$0xf0]  ;;  %2137 = vmatpush.bf16.msrb.mxu1 %v3525_v59  ;;  %v3606_v59 = vld [vmem:[%s5201_s7 + $0x148] sm:$0xf0] }
 0x36b   :  { %2149 = vmatpush.bf16.msrb.mxu2 %v3605_v62  ;;  %2164 = vmatpush.bf16.msrb.mxu3 %v3473_v5  ;;  %v3609_v62 = vor.u32 %v4014_v58, %v3606_v59  ;;  %v4012_v5 = vld [vmem:[%s5201_s7 + $0x134] sm:$0xf]  ;;  %v4034_v58 = vld [vmem:[#allocation2 + $0x60] sm:$0xff]  ;;  %v4025_v59 = vld [vmem:[#allocation2 + $0x18] sm:$0xff] }
 0x36c   :  { %1769 = vmatmul.bf16.vlgmr.msra.gmra.mxu2 %v1546_v1  ;;  %v3445_v1 = vor.u32 %v3975_v0, %v3444_v63  ;;  %v3994_v63 = vld [vmem:[%s5201_s7 + $0xa4] sm:$0xf]  ;;  %v3526_v0 = vld [vmem:[%s5201_s7 + $0xa8] sm:$0xf0]  ;;  %v3601_v7 = vor.u32 %v4012_v5, %v3598_v6 }
 0x36d   :  { %v3529_v2 = vor.u32 %v3994_v63, %v3526_v0  ;;  %v4024_v63 = vld [vmem:[#allocation2 + $0x10] sm:$0xff]  ;;  %v4043_v6 = vld [vmem:[#allocation2 + $0xa8] sm:$0xff] }
 0x36e   :  { %2125 = vmatpush.bf16.msra.mxu0 %v3445_v1  ;;  %2138 = vmatpush.bf16.msrb.mxu1 %v3517_v10  ;;  %v4010_v10 = vld [vmem:[%s5201_s7 + $0x124] sm:$0xf]  ;;  %v4032_v0 = vld [vmem:[#allocation2 + $0x50] sm:$0xff] }
 0x36f   :  { %2150 = vmatpush.bf16.msrb.mxu2 %v3597_v13  ;;  %2165 = vmatpush.bf16.msrb.mxu3 %v3465_v17  ;;  %v3990_v13 = vld [vmem:[%s5201_s7 + $0x84] sm:$0xf]  ;;  %v3593_v17 = vor.u32 %v4010_v10, %v3590_v12  ;;  %v4061_v10 = vld [vmem:[#allocation2 + $0x138] sm:$0xff] }
 0x370   :  { %v3513_v23 = vor.u32 %v3990_v13, %v3510_v14  ;;  %v4042_v12 = vld [vmem:[#allocation2 + $0xa0] sm:$0xff] }
 0x371   :  { %v4050_v13 = vld [vmem:[#allocation2 + $0xe0] sm:$0xff] }
 0x372   :  { %2174 = vmatpush.bf16.msrb.mxu0 %v3569_v9  ;;  %2139 = vmatpush.bf16.msrb.mxu1 %v3509_v22  ;;  %v3518_v9 = vld [vmem:[%s5201_s7 + $0x98] sm:$0xf0] }
 0x373   :  { %2151 = vmatpush.bf16.msrb.mxu2 %v3589_v26  ;;  %2166 = vmatpush.bf16.msrb.mxu3 %v3457_v32  ;;  %v3521_v11 = vor.u32 %v3992_v8, %v3518_v9  ;;  %v4022_v8 = vld [vmem:[#allocation2] sm:$0xff] }
 0x374   :  { %v4030_v9 = vld [vmem:[#allocation2 + $0x40] sm:$0xff] }
 0x376   :  { %2175 = vmatpush.bf16.msrb.mxu0 %v3561_v21  ;;  %2188 = vmatpush.bf16.msra.mxu1 %v3633_v28  ;;  %v3582_v21 = vld [vmem:[%s5201_s7 + $0x118] sm:$0xf0] }
 0x377   :  { %2152 = vmatpush.bf16.msrb.mxu2 %v3581_v38  ;;  %2167 = vmatpush.bf16.msrb.mxu3 %v3449_v44  ;;  %v3585_v27 = vor.u32 %v4008_v20, %v3582_v21  ;;  %v4049_v20 = vld [vmem:[#allocation2 + $0xd8] sm:$0xff]  ;;  %v4059_v21 = vld [vmem:[#allocation2 + $0x128] sm:$0xff] }
 0x37a   :  { %2176 = vmatpush.bf16.msrb.mxu0 %v3553_v34  ;;  %2189 = vmatpush.bf16.msra.mxu1 %v3625_v40 }
 0x37b   :  { %2153 = vmatpush.bf16.msrb.mxu2 %v3573_v49  ;;  %2674 = vmatpush.bf16.msra.mxu3 %v4037_v51  ;;  %v4055_v51 = vld [vmem:[#allocation2 + $0x108] sm:$0xff] }
 0x37e   :  { %2177 = vmatpush.bf16.msrb.mxu0 %v3545_v48  ;;  %2190 = vmatpush.bf16.msra.mxu1 %v3617_v52  ;;  %v4028_v52 = vld [vmem:[#allocation2 + $0x30] sm:$0xff] }
 0x37f   :  { %2660 = vmatpush.bf16.msra.mxu2 %v4029_v50  ;;  %2675 = vmatpush.bf16.msra.mxu3 %v4036_v54 }
 0x382   :  { %2178 = vmatpush.bf16.msrb.mxu0 %v3537_v57  ;;  %2191 = vmatpush.bf16.msra.mxu1 %v3609_v62  ;;  %v4026_v57 = vld [vmem:[#allocation2 + $0x20] sm:$0xff]  ;;  %v4053_v62 = vld [vmem:[#allocation2 + $0xf8] sm:$0xff] }
 0x383   :  { %2661 = vmatpush.bf16.msra.mxu2 %v4028_v52  ;;  %v4063_v52 = vld [vmem:[#allocation2 + $0x148] sm:$0xff] }
 0x386   :  { %2179 = vmatpush.bf16.msrb.mxu0 %v3529_v2  ;;  %2192 = vmatpush.bf16.msra.mxu1 %v3601_v7  ;;  %v4052_v2 = vld [vmem:[#allocation2 + $0xf0] sm:$0xff]  ;;  %v4051_v7 = vld [vmem:[#allocation2 + $0xe8] sm:$0xff] }
 0x387   :  { %2662 = vmatpush.bf16.msra.mxu2 %v4027_v55 }
 0x38a   :  { %2180 = vmatpush.bf16.msrb.mxu0 %v3521_v11  ;;  %2193 = vmatpush.bf16.msra.mxu1 %v3593_v17  ;;  %v4069_v11 = vld [vmem:[#allocation2 + $0x178] sm:$0xff] }
 0x38b   :  { %2663 = vmatpush.bf16.msra.mxu2 %v4026_v57 }
 0x38e   :  { %2181 = vmatpush.bf16.msrb.mxu0 %v3513_v23  ;;  %2194 = vmatpush.bf16.msra.mxu1 %v3585_v27  ;;  %v4040_v23 = vld [vmem:[#allocation2 + $0x90] sm:$0xff] }
 0x38f   :  { %2664 = vmatpush.bf16.msra.mxu2 %v4025_v59 }
 0x392   :  { %2195 = vmatpush.bf16.msra.mxu1 %v3577_v33 }
 0x393   :  { %2665 = vmatpush.bf16.msra.mxu2 %v4024_v63 }
 0x3e3   :  { %v1756_v56 = vpop.f32.mrf.mxu1 }
 0x3eb   :  { %v1758_v18 = vpop.f32.mrf.mxu1 }
 0x3ec   :  { %v1784_v60 = vpop.f32.mrf.mxu3 }
 0x3ef   :  { %v1770_v61 = vpop.f32.mrf.mxu2 }
 0x3f0   :  { %v1771_v1 = vadd.f32 %v1770_v61, %v1756_v56  ;;  %v4035_v56 = vld [vmem:[#allocation2 + $0x68] sm:$0xff]  ;;  %v4045_v61 = vld [vmem:[#allocation2 + $0xb8] sm:$0xff] }
 0x3f1   :  { %2676 = vmatpush.bf16.msra.mxu3 %v4035_v56 }
 0x3f2   :  { %v1785_v3 = vadd.f32 %v1784_v60, %v1771_v1  ;;  %v4033_v60 = vld [vmem:[#allocation2 + $0x58] sm:$0xff]  ;;  %v4044_v1 = vld [vmem:[#allocation2 + $0xb0] sm:$0xff] }
 0x3f4   :  { %v1793_v15 = vmul.f32 %v4161_v4, %v1785_v3  ;;  %v1786_v24 = vpop.f32.mrf.mxu3  ;;  %v4023_v3 = vld [vmem:[#allocation2 + $0x8] sm:$0xff] }
 0x3f5   :  { %2677 = vmatpush.bf16.msra.mxu3 %v4034_v58  ;;  %2666 = vmatpush.bf16.msra.mxu2 %v4023_v3 }
 0x3f6   :  { %v1799_v25 = vadd.f32 %v4162_v16, %v1793_v15  ;;  %v4060_v15 = vld [vmem:[#allocation2 + $0x130] sm:$0xff] }
 0x3f7   :  { %v1772_v19 = vpop.f32.mrf.mxu2 }
 0x3f8   :  { %v1773_v22 = vadd.f32 %v1772_v19, %v1758_v18  ;;  %v1801_v31 = vmax.f32 %v1799_v25, 0.0  ;;  %v4041_v19 = vld [vmem:[#allocation2 + $0x98] sm:$0xff]  ;;  %v4058_v25 = vld [vmem:[#allocation2 + $0x120] sm:$0xff] }
 0x3f9   :  { %2678 = vmatpush.bf16.msra.mxu3 %v4033_v60  ;;  %2667 = vmatpush.bf16.msra.mxu2 %v4022_v8 }
 0x3fa   :  { %v1787_v26 = vadd.f32 %v1786_v24, %v1773_v22  ;;  %v1805_v35 = vrot.slane %v1801_v31, 1  ;;  %v4067_v22 = vld [vmem:[#allocation2 + $0x168] sm:$0xff]  ;;  %v4048_v24 = vld [vmem:[#allocation2 + $0xd0] sm:$0xff] }
 0x3fc   :  { %v1794_v28 = vmul.f32 %v4161_v4, %v1787_v26  ;;  %v4031_v4 = vld [vmem:[#allocation2 + $0x48] sm:$0xff]  ;;  %v4066_v26 = vld [vmem:[#allocation2 + $0x160] sm:$0xff] }
 0x3fd   :  { %2679 = vmatpush.bf16.msra.mxu3 %v4032_v0 }
 0x3fe   :  { %v1800_v32 = vadd.f32 %v4162_v16, %v1794_v28  ;;  %v4068_v16 = vld [vmem:[#allocation2 + $0x170] sm:$0xff]  ;;  %v4039_v28 = vld [vmem:[#allocation2 + $0x88] sm:$0xff] }
 0x400   :  { %v1802_v34 = vmax.f32 %v1800_v32, 0.0 }
 0x401   :  { %2680 = vmatpush.bf16.msra.mxu3 %v4031_v4 }
 0x402   :  { %v1806_v36 = vrot.slane %v1802_v34, 1 }
 0x404   :  { %v1807_v37 = vsel %vm95_vm0, %v1805_v35, %v1806_v36  ;;  %v1811_v38 = vmax.f32 %v1802_v34, %v1806_v36  ;;  %v2202_v34 = vld [vmem:[%s5202_s8] sm:$0x3]  ;;  %v4057_v36 = vld [vmem:[#allocation2 + $0x118] sm:$0xff] }
 0x405   :  { %v1810_v39 = vmax.f32 %v1801_v31, %v1807_v37  ;;  %2681 = vmatpush.bf16.msra.mxu3 %v4030_v9  ;;  %v4065_v37 = vld [vmem:[#allocation2 + $0x158] sm:$0xff]  ;;  %v2205_v50 = vperm.slane %v2202_v34, 1 }
 0x406   :  { %v1813_v40 = vpack.c.bf16 %v1811_v38, %v1811_v38  ;;  %v4038_v38 = vld [vmem:[#allocation2 + $0x80] sm:$0xff] }
 0x407   :  { %v1812_v41 = vpack.c.bf16 %v1810_v39, %v1810_v39 }
 0x408   :  { %v1817_v42 = vunpack.c.l.b16 %v1813_v40  ;;  %v4046_v40 = vld [vmem:[#allocation2 + $0xc0] sm:$0xff] }
 0x409   :  { %v1816_v43 = vunpack.c.l.b16 %v1812_v41  ;;  %v4056_v41 = vld [vmem:[#allocation2 + $0x110] sm:$0xff] }
 0x40b   :  { %v1818_v44 = vpack.c.b16 %v1817_v42, %v1816_v43  ;;  %v4064_v42 = vld [vmem:[#allocation2 + $0x150] sm:$0xff] }
 0x40d   :  { %2126 = vmatmul.bf16.vlgmr.msra.gmra.mxu0 %v1818_v44  ;;  %2168 = vmatmul.bf16.vlgmr.msrb.gmra.mxu3 %v1818_v44  ;;  %v1828_v45 = vrot.slane %v1818_v44, 1  ;;  %v1823_v46 = vshll.u32 %v1818_v44, 16  ;;  %v1821_v47 = vshrl.u32 %v1818_v44, 16  ;;  %v2204_v44 = vperm.slane %v2202_v34, 0 }
 0x40e   :  { %2688 = vmatpush.bf16.msra.mxu0 %v4045_v61  ;;  %2730 = vmatpush.bf16.msrb.mxu3 %v4069_v11  ;;  %v4054_v61 = vld [vmem:[#allocation2 + $0x100] sm:$0xff] }
 0x40f   :  { %2154 = vmatmul.bf16.vlgmr.msrb.gmra.mxu2 %v1828_v45  ;;  %v1825_v48 = vrot.slane %v1823_v46, 1  ;;  %v2212_v46 = vld [vmem:[%s5203_s9] sm:$0x3] }
 0x410   :  { %2716 = vmatpush.bf16.msrb.mxu2 %v4061_v10  ;;  %v2214_v55 = vperm.slane %v2212_v46, 0  ;;  %v2215_v59 = vperm.slane %v2212_v46, 1 }
 0x411   :  { %v1826_v49 = vor.u32 %v1825_v48, %v1821_v47 }
 0x412   :  { %2689 = vmatpush.bf16.msra.mxu0 %v4044_v1  ;;  %2731 = vmatpush.bf16.msrb.mxu3 %v4068_v16 }
 0x413   :  { %2140 = vmatmul.bf16.vlgmr.msrb.gmra.mxu1 %v1826_v49 }
 0x414   :  { %2702 = vmatpush.bf16.msrb.mxu1 %v4053_v62  ;;  %2717 = vmatpush.bf16.msrb.mxu2 %v4060_v15  ;;  %v4062_v62 = vld [vmem:[#allocation2 + $0x140] sm:$0xff] }
 0x416   :  { %2690 = vmatpush.bf16.msra.mxu0 %v4043_v6  ;;  %2732 = vmatpush.bf16.msrb.mxu3 %v4067_v22 }
 0x418   :  { %2703 = vmatpush.bf16.msrb.mxu1 %v4052_v2  ;;  %2718 = vmatpush.bf16.msrb.mxu2 %v4059_v21 }
 0x41a   :  { %2691 = vmatpush.bf16.msra.mxu0 %v4042_v12  ;;  %2733 = vmatpush.bf16.msrb.mxu3 %v4066_v26 }
 0x41c   :  { %2704 = vmatpush.bf16.msrb.mxu1 %v4051_v7  ;;  %2719 = vmatpush.bf16.msrb.mxu2 %v4058_v25 }
 0x41d   :  { %2182 = vmatmul.bf16.vlgmr.msrb.gmra.mxu0 %v1826_v49 }
 0x41e   :  { %2692 = vmatpush.bf16.msra.mxu0 %v4041_v19  ;;  %2734 = vmatpush.bf16.msrb.mxu3 %v4065_v37 }
 0x420   :  { %2705 = vmatpush.bf16.msrb.mxu1 %v4050_v13  ;;  %2720 = vmatpush.bf16.msrb.mxu2 %v4057_v36 }
 0x422   :  { %2693 = vmatpush.bf16.msra.mxu0 %v4040_v23  ;;  %2735 = vmatpush.bf16.msrb.mxu3 %v4064_v42 }
 0x423   :  { %2196 = vmatmul.bf16.vlgmr.msra.gmra.mxu1 %v1828_v45 }
 0x424   :  { %2706 = vmatpush.bf16.msrb.mxu1 %v4049_v20  ;;  %2721 = vmatpush.bf16.msrb.mxu2 %v4056_v41  ;;  %v4146_v41 = vld [vmem:[%s5207_s13 + $0x30] sm:$0xff]  }
 0x425   :  { %v4129_v42 = vunpack.c.h.bf16 %v4146_v41 }
 0x426   :  { %2694 = vmatpush.bf16.msra.mxu0 %v4039_v28  ;;  %2736 = vmatpush.bf16.msrb.mxu3 %v4063_v52  ;;  %v4143_v52 = vld [vmem:[%s5207_s13 + $0x18] sm:$0xff]  }
 0x428   :  { %2707 = vmatpush.bf16.msrb.mxu1 %v4048_v24  ;;  %2722 = vmatpush.bf16.msrb.mxu2 %v4055_v51 }
 0x42a   :  { %2695 = vmatpush.bf16.msra.mxu0 %v4038_v38  ;;  %2737 = vmatpush.bf16.msrb.mxu3 %v4062_v62  ;;  %v4147_v38 = vld [vmem:[%s5207_s13 + $0x38] sm:$0xff]  }
 0x42c   :  { %2708 = vmatpush.bf16.msrb.mxu1 %v4047_v29  ;;  %2723 = vmatpush.bf16.msrb.mxu2 %v4054_v61 }
 0x430   :  { %2709 = vmatpush.bf16.msrb.mxu1 %v4046_v40  ;;  %v4132_v40 = vunpack.c.l.bf16 %v4147_v38 }
 0x48a   :  { %v2127_v5 = vpop.f32.mrf.mxu0 }
 0x490   :  { %v2141_v14 = vpop.f32.mrf.mxu1  ;;  %v2169_v35 = vpop.f32.mrf.mxu3 }
 0x491   :  { %v2142_v33 = vadd.f32 %v2141_v14, %v2127_v5 }
 0x492   :  { %v2129_v17 = vpop.f32.mrf.mxu0  ;;  %v2155_v18 = vpop.f32.mrf.mxu2 }
 0x493   :  { %v2156_v43 = vadd.f32 %v2155_v18, %v2142_v33 }
 0x495   :  { %v2208_v54 = vmul.f32 %v2204_v44, %v2156_v43  ;;  %v4128_v43 = vunpack.c.l.bf16 %v4146_v41 }
 0x497   :  { %v2218_v63 = vadd.f32 %v2214_v55, %v2208_v54  ;;  %v4117_v54 = vunpack.c.h.bf16 %v4143_v52 }
 0x498   :  { %v2143_v27 = vpop.f32.mrf.mxu1  ;;  %v2171_v60 = vpop.f32.mrf.mxu3 }
 0x499   :  { %v2144_v30 = vadd.f32 %v2143_v27, %v2129_v17  ;;  %v2222_v5 = vmax.f32 %v2218_v63, 0.0  ;;  %v4141_v63 = vld [vmem:[%s5207_s13 + $0x8] sm:$0xff]  }
 0x49a   :  { %v2157_v31 = vpop.f32.mrf.mxu2  ;;  %v2183_v32 = vpop.f32.mrf.mxu0 }
 0x49b   :  { %v2158_v39 = vadd.f32 %v2157_v31, %v2144_v30  ;;  %v2184_v45 = vadd.f32 %v2183_v32, %v2169_v35  ;;  %v2230_v10 = vrot.slane %v2222_v5, 1 }
 0x49d   :  { %v2210_v48 = vmul.f32 %v2204_v44, %v2158_v39  ;;  %v4133_v39 = vunpack.c.h.bf16 %v4147_v38  ;;  %v4145_v44 = vld [vmem:[%s5207_s13 + $0x28] sm:$0xff]  }
 0x49f   :  { %v2220_v57 = vadd.f32 %v2214_v55, %v2210_v48  ;;  %2805 = vmatpush.msrb.mxu0 %v4133_v39  ;;  %v4124_v48 = vunpack.c.l.bf16 %v4145_v44 }
 0x4a0   :  { %v2197_v47 = vpop.f32.mrf.mxu1 }
 0x4a1   :  { %v2198_v49 = vadd.f32 %v2197_v47, %v2184_v45  ;;  %v2224_v2 = vmax.f32 %v2220_v57, 0.0  ;;  %2806 = vmatpush.msrb.mxu0 %v4132_v40  ;;  %v4125_v45 = vunpack.c.h.bf16 %v4145_v44  ;;  %v2804_v40 = vld [vmem:[%s5208_s14] sm:$0x1] }
 0x4a2   :  { %v2185_v56 = vpop.f32.mrf.mxu0 }
 0x4a3   :  { %v2209_v58 = vmul.f32 %v2205_v50, %v2198_v49  ;;  %v2186_v0 = vadd.f32 %v2185_v56, %v2171_v60  ;;  %v2231_v7 = vrot.slane %v2224_v2, 1  ;;  %2807 = vmatpush.msrb.mxu0 %v4129_v42  ;;  %v4144_v49 = vld [vmem:[%s5207_s13 + $0x20] sm:$0xff]   ;;  %v4142_v60 = vld [vmem:[%s5207_s13 + $0x10] sm:$0xff]  }
 0x4a4   :  { %v4120_v51 = vunpack.c.l.bf16 %v4144_v49  ;;  %v4113_v61 = vunpack.c.h.bf16 %v4142_v60  ;;  %v4112_v62 = vunpack.c.l.bf16 %v4142_v60 }
 0x4a5   :  { %v2219_v3 = vadd.f32 %v2215_v59, %v2209_v58  ;;  %v2232_v12 = vsel %vm95_vm0, %v2230_v10, %v2231_v7  ;;  %v2242_v15 = vmax.f32 %v2224_v2, %v2231_v7  ;;  %2808 = vmatpush.msrb.mxu0 %v4128_v43  ;;  %v4109_v2 = vunpack.c.h.bf16 %v4141_v63 }
 0x4a6   :  { %v2240_v18 = vmax.f32 %v2222_v5, %v2232_v12 }
 0x4a7   :  { %v2223_v8 = vmax.f32 %v2219_v3, 0.0  ;;  %2809 = vmatpush.msrb.mxu0 %v4125_v45  ;;  %v4103_v3 = vld [vmem:[%s5207_s13] sm:$0xff]  }
 0x4a8   :  { %v2199_v1 = vpop.f32.mrf.mxu1  ;;  %v4104_v12 = vunpack.c.l.bf16 %v4103_v3 }
 0x4a9   :  { %v2200_v4 = vadd.f32 %v2199_v1, %v2186_v0  ;;  %v2233_v13 = vrot.slane %v2223_v8, 1  ;;  %2810 = vmatpush.msrb.mxu0 %v4124_v48 }
 0x4ab   :  { %v2211_v6 = vmul.f32 %v2205_v50, %v2200_v4  ;;  %v4121_v50 = vunpack.c.h.bf16 %v4144_v49  ;;  %v4108_v4 = vunpack.c.l.bf16 %v4141_v63 }
 0x4ad   :  { %v2221_v9 = vadd.f32 %v2215_v59, %v2211_v6  ;;  %2811 = vmatpush.msrb.mxu0 %v4121_v50  ;;  %v4116_v59 = vunpack.c.l.bf16 %v4143_v52 }
 0x4af   :  { %v2225_v11 = vmax.f32 %v2221_v9, 0.0  ;;  %2812 = vmatpush.msrb.mxu0 %v4120_v51  ;;  %v4105_v9 = vunpack.c.h.bf16 %v4103_v3 }
 0x4b1   :  { %v2234_v14 = vrot.slane %v2225_v11, 1  ;;  %2813 = vmatpush.msrb.mxu0 %v4117_v54 }
 0x4b3   :  { %v2235_v16 = vsel %vm95_vm0, %v2233_v13, %v2234_v14  ;;  %v2243_v17 = vmax.f32 %v2225_v11, %v2234_v14  ;;  %2814 = vmatpush.msrb.mxu0 %v4116_v59 }
 0x4b4   :  { %v2241_v19 = vmax.f32 %v2223_v8, %v2235_v16 }
 0x4b5   :  { %v2245_v20 = vpack.c.bf16 %v2243_v17, %v2242_v15  ;;  %2815 = vmatpush.msrb.mxu0 %v4113_v61  ;;  %v4163_v15 = vld [vmem:[%s5205_s11] ss:$0 sm:$0xff] }
 0x4b6   :  { %v2244_v21 = vpack.c.bf16 %v2241_v19, %v2240_v18  ;;  %v4164_v19 = vld [vmem:[%s5206_s12] ss:$0 sm:$0xff] }
 0x4b7   :  { %v2250_v22 = vunpack.c.l.b16 %v2245_v20  ;;  %v2251_v23 = vunpack.c.h.b16 %v2245_v20  ;;  %2816 = vmatpush.msrb.mxu0 %v4112_v62 }
 0x4b8   :  { %v2248_v24 = vunpack.c.l.b16 %v2244_v21  ;;  %v2249_v25 = vunpack.c.h.b16 %v2244_v21 }
 0x4b9   :  { %2817 = vmatpush.msrb.mxu0 %v4109_v2 }
 0x4ba   :  { %v2252_v26 = vpack.c.b16 %v2250_v22, %v2248_v24  ;;  %v2253_v27 = vpack.c.b16 %v2251_v23, %v2249_v25 }
 0x4bb   :  { %2818 = vmatpush.msrb.mxu0 %v4108_v4 }
 0x4bc   :  { %2668 = vmatmul.bf16.vlgmr.msra.gmra.mxu2 %v2252_v26  ;;  %2682 = vmatmul.bf16.vlgmr.msra.gmra.mxu3 %v2253_v27  ;;  %v2259_v28 = vshll.u32 %v2252_v26, 16  ;;  %v2266_v29 = vshll.u32 %v2253_v27, 16  ;;  %v2257_v30 = vshrl.u32 %v2252_v26, 16  ;;  %v2264_v32 = vshrl.u32 %v2253_v27, 16 }
 0x4bd   :  { %v2272_v36 = vrot.slane %v2252_v26, 1  ;;  %v2273_v37 = vrot.slane %v2253_v27, 1  ;;  %2819 = vmatpush.msrb.mxu0 %v4105_v9 }
 0x4be   :  { %v2261_v31 = vrot.slane %v2259_v28, 1  ;;  %v2268_v33 = vrot.slane %v2266_v29, 1 }
 0x4bf   :  { %2820 = vmatpush.msrb.mxu0 %v4104_v12 }
 0x4c0   :  { %v2262_v34 = vor.u32 %v2261_v31, %v2257_v30  ;;  %v2269_v35 = vor.u32 %v2268_v33, %v2264_v32 }
 0x4c2   :  { %2696 = vmatmul.bf16.vlgmr.msra.gmra.mxu0 %v2262_v34  ;;  %2710 = vmatmul.bf16.vlgmr.msrb.gmra.mxu1 %v2269_v35 }
 0x4cc   :  { %2724 = vmatmul.bf16.vlgmr.msrb.gmra.mxu2 %v2272_v36  ;;  %2738 = vmatmul.bf16.vlgmr.msrb.gmra.mxu3 %v2273_v37 }
 0x53f   :  { %v2669_v46 = vpop.f32.mrf.mxu2  ;;  %v2683_v47 = vpop.f32.mrf.mxu3 }
 0x540   :  { %v2684_v55 = vadd.f32 %v2683_v47, %v2669_v46  ;;  %v2697_v56 = vpop.f32.mrf.mxu0  ;;  %v2711_v1 = vpop.f32.mrf.mxu1 }
 0x542   :  { %v2698_v0 = vadd.f32 %v2697_v56, %v2684_v55 }
 0x544   :  { %v2712_v5 = vadd.f32 %v2711_v1, %v2698_v0 }
 0x547   :  { %v2671_v57 = vpop.f32.mrf.mxu2  ;;  %v2685_v58 = vpop.f32.mrf.mxu3 }
 0x548   :  { %v2686_v6 = vadd.f32 %v2685_v58, %v2671_v57  ;;  %v2699_v11 = vpop.f32.mrf.mxu0  ;;  %v2713_v16 = vpop.f32.mrf.mxu1 }
 0x54a   :  { %v2700_v13 = vadd.f32 %v2699_v11, %v2686_v6 }
 0x54c   :  { %v2714_v17 = vadd.f32 %v2713_v16, %v2700_v13 }
 0x54f   :  { %v2725_v7 = vpop.f32.mrf.mxu2  ;;  %v2739_v8 = vpop.f32.mrf.mxu3 }
 0x550   :  { %v2726_v10 = vadd.f32 %v2725_v7, %v2712_v5 }
 0x552   :  { %v2740_v14 = vadd.f32 %v2739_v8, %v2726_v10 }
 0x554   :  { %v2748_v18 = vmul.f32 %v4163_v15, %v2740_v14 }
 0x556   :  { %v2754_v23 = vadd.f32 %v4164_v19, %v2748_v18 }
 0x557   :  { %v2727_v20 = vpop.f32.mrf.mxu2  ;;  %v2741_v22 = vpop.f32.mrf.mxu3 }
 0x558   :  { %v2728_v21 = vadd.f32 %v2727_v20, %v2714_v17  ;;  %v2756_v26 = vmax.f32 %v2754_v23, 0.0 }
 0x55a   :  { %v2742_v24 = vadd.f32 %v2741_v22, %v2728_v21  ;;  %v2760_v29 = vrot.slane %v2756_v26, 1 }
 0x55c   :  { %v2749_v25 = vmul.f32 %v4163_v15, %v2742_v24 }
 0x55e   :  { %v2755_v27 = vadd.f32 %v4164_v19, %v2749_v25 }
 0x560   :  { %v2757_v28 = vmax.f32 %v2755_v27, 0.0 }
 0x562   :  { %v2761_v30 = vrot.slane %v2757_v28, 1 }
 0x564   :  { %v2762_v31 = vsel %vm95_vm0, %v2760_v29, %v2761_v30 }
 0x565   :  { %v2764_v32 = vmax.f32 %v2756_v26, %v2762_v31 }
 0x567   :  { %v2765_v33 = vrot.slane %v2764_v32, 4 }
 0x569   :  { %v2766_v34 = vadd.f32 %v2765_v33, %v2764_v32 }
 0x56b   :  { %v2767_v35 = vrot.slane %v2766_v34, 2 }
 0x56d   :  { %v2768_v36 = vadd.f32 %v2767_v35, %v2766_v34 }
 0x56f   :  { %v2769_v37 = vrot.slane %v2768_v36, 1 }
 0x571   :  { %v2770_v38 = vadd.f32 %v2769_v37, %v2768_v36 }
 0x573   :  { %v2771_v39 = vmul.f32 %v2770_v38, %v4753_v53 }
 0x575   :  { %2821 = vmatmul.f32.vlgmr.msrb.gmra.mxu0 %v2771_v39 }
 0x5f2   :  { %v2822_v41 = vpop.f32.mrf.mxu0 }
 0x5f3   :  { %v2823_v42 = vadd.f32 %v2822_v41, %v2804_v40 }
 0x5f5   :  { %2825 = vst.msk [vmem:[#allocation5 + $0x1] sm:$0x1] %vm1450_vm3, %v2823_v42 }
 0x5f6   :  { %2836 = dma.vmem_to_hbm [thread:$0]  %s2832_s18, 32, %s2834_s4, [#allocation4]  }
 0x5f7   :  { %4217 = dma.done.wait [#allocation4], 32  }
 0x5f8   :  { %4218 = vsyncadd [#allocation4], 4294967264 }
 0x5f9   :  { %2841 = vsyncpa [#allocation3], 1 }
 0x5fa   :  { %2842 = vsyncpa [#allocation4], 1 }

</bundles_post_ra>
